<compile_context>
chip_gen: v6e
topology: v6e:2x2x1
jax: 0.10.0
libtpu: 0.0.40
codegen_flags: <defaults>
</compile_context>

<pallas_src>
import jax
import jax.numpy as jnp
from jax.experimental import pallas as pl
from jax.experimental.pallas import tpu as pltpu

LANE = 128   # lane width; every feature dim zero-padded to this
PAD = 512    # node-count pad unit (multiple of both TM choices and of int8 (32,128) tiling)


def _hw_config():
    """Derive tiling / limits from the local chip (review items 1, 4, 5)."""
    try:
        cap = int(pltpu.get_tpu_info().vmem_capacity_bytes)
    except Exception:                            # no TPU info -> assume smallest VMEM (v7x)
        cap = 64 * 1024 * 1024
    big_vmem = cap >= 100 * 1024 * 1024          # v5e / v6e: 128 MiB per core
    tm = 256 if big_vmem else 128                # item 5: bigger row tile on 128 MiB parts
    tk_target = 4096 if big_vmem else 2048       # item 6: reduction-axis tile target
    adj_buffers = 3 if big_vmem else None        # item 4: deeper adjacency pipelining
    vmem_limit = int(cap * 0.75)                 # item 1: headroom below physical VMEM
    return tm, tk_target, adj_buffers, vmem_limit


TM, TK_TARGET, ADJ_BUFFERS, VMEM_LIMIT = _hw_config()

# pipeline_mode hints (items 2 & 4); disabled automatically if this JAX rejects them.
_PIPELINE_HINTS_OK = [hasattr(pl, "Buffered")]


# ---------------------------------------------------------------------------
# Pallas kernels
# ---------------------------------------------------------------------------
def _conv1_kernel(a_ref, xw_ref, xs_ref, w1s_ref, b1_ref, w2a_ref, invdeg_ref,
                  h1_ref, h1w2_ref, acc_ref):
    """conv1 (SAGEConvCat + ReLU) with a K-tiled aggregation reduction.

    Accumulates A_counts(TM,TK) @ (X @ W1_agg)(TK,LANE) into an f32 scratch; on the last
    K step applies the 1/deg mean scaling, adds X_self @ W1_self + b1, ReLUs, and also
    emits h1 @ W2_agg so kernel 2 can stream it directly.
    """
    k = pl.program_id(1)

    @pl.when(k == 0)
    def _():
        acc_ref[...] = jnp.zeros_like(acc_ref)

    a_blk = a_ref[...].astype(jnp.bfloat16)            # int8 counts -> bf16 (exact <= 256)
    acc_ref[...] += jnp.dot(a_blk, xw_ref[...], preferred_element_type=jnp.float32)

    @pl.when(k == pl.num_programs(1) - 1)
    def _():
        agg = acc_ref[...] * invdeg_ref[...]           # mean aggregation, f32 row scale
        h_self = jnp.dot(xs_ref[...], w1s_ref[...], preferred_element_type=jnp.float32)
        h1 = jnp.maximum(agg + h_self + b1_ref[...], 0.0).astype(jnp.bfloat16)
        h1_ref[...] = h1
        # Pre-multiply by conv2's aggregation weight (item 7) -> kernel 2 streams this slab.
        h1w2_ref[...] = jnp.dot(h1, w2a_ref[...],
                                preferred_element_type=jnp.float32).astype(jnp.bfloat16)


def _tail_kernel(a_ref, h1w2_ref, h1s_ref, w2s_ref, b2_ref, w3_ref, b3_ref,
                 w4_ref, b4_ref, invdeg_ref, o_ref, acc_ref):
    """Fused conv2 + ReLU + lin1 + ReLU + lin2 with a K-tiled aggregation reduction."""
    k = pl.program_id(1)

    @pl.when(k == 0)
    def _():
        acc_ref[...] = jnp.zeros_like(acc_ref)

    a_blk = a_ref[...].astype(jnp.bfloat16)
    acc_ref[...] += jnp.dot(a_blk, h1w2_ref[...], preferred_element_type=jnp.float32)

    @pl.when(k == pl.num_programs(1) - 1)
    def _():
        agg = acc_ref[...] * invdeg_ref[...]
        h_self = jnp.dot(h1s_ref[...], w2s_ref[...], preferred_element_type=jnp.float32)
        h2 = jnp.maximum(agg + h_self + b2_ref[...], 0.0)
        # TODO(synk): F.dropout(p=0.5, training=train_status) sits here; identity at inference.
        s1 = jnp.maximum(
            jnp.dot(h2.astype(jnp.bfloat16), w3_ref[...],
                    preferred_element_type=jnp.float32) + b3_ref[...], 0.0)
        s2 = jnp.dot(s1.astype(jnp.bfloat16), w4_ref[...],
                     preferred_element_type=jnp.float32) + b4_ref[...]
        o_ref[...] = s2           # f32 slab; only column 0 is real (num_classes=1), item 10


# ---------------------------------------------------------------------------
# pallas_call wrappers
# ---------------------------------------------------------------------------
def _spec(shape, index_map, buffers, hints):
    """BlockSpec with an optional pipeline_mode buffering hint (items 2 & 4)."""
    if hints and buffers is not None and hasattr(pl, "Buffered"):
        try:
            return pl.BlockSpec(shape, index_map, pipeline_mode=pl.Buffered(buffers))
        except TypeError:
            pass
    return pl.BlockSpec(shape, index_map)


def _compiler_params():
    return pltpu.CompilerParams(dimension_semantics=("parallel", "arbitrary"),
                                vmem_limit_bytes=VMEM_LIMIT)


def _sage_first_layer(a_counts, xw1, x_pad, w1s, b1, w2a, inv_deg, tk, hints):
    n_pad = a_counts.shape[0]
    grid = (n_pad // TM, n_pad // tk)
    return pl.pallas_call(
        _conv1_kernel,
        out_shape=(jax.ShapeDtypeStruct((n_pad, LANE), jnp.bfloat16),    # h1
                   jax.ShapeDtypeStruct((n_pad, LANE), jnp.bfloat16)),   # h1 @ W2_agg
        grid_spec=pltpu.PrefetchScalarGridSpec(
            num_scalar_prefetch=0,
            grid=grid,
            in_specs=[
                _spec((TM, tk), lambda i, k: (i, k), ADJ_BUFFERS, hints),  # int8 adjacency counts
                pl.BlockSpec((tk, LANE), lambda i, k: (k, 0)),             # X @ W1_agg stream
                pl.BlockSpec((TM, LANE), lambda i, k: (i, 0)),             # self features
                _spec((LANE, LANE), lambda i, k: (0, 0), 1, hints),        # W1_self   (invariant)
                _spec((1, LANE), lambda i, k: (0, 0), 1, hints),           # b1        (invariant)
                _spec((LANE, LANE), lambda i, k: (0, 0), 1, hints),        # W2_agg    (invariant)
                pl.BlockSpec((TM, 1), lambda i, k: (i, 0)),                # 1/deg
            ],
            out_specs=[
                pl.BlockSpec((TM, LANE), lambda i, k: (i, 0)),
                pl.BlockSpec((TM, LANE), lambda i, k: (i, 0)),
            ],
            scratch_shapes=[pltpu.VMEM((TM, LANE), jnp.float32)],          # agg accumulator
        ),
        compiler_params=_compiler_params(),
    )(a_counts, xw1, x_pad, w1s, b1, w2a, inv_deg)


def _sage_tail_fused(a_counts, h1w2, h1, w2s, b2, w3, b3, w4, b4, inv_deg, tk, hints):
    n_pad = a_counts.shape[0]
    grid = (n_pad // TM, n_pad // tk)
    return pl.pallas_call(
        _tail_kernel,
        out_shape=jax.ShapeDtypeStruct((n_pad, LANE), jnp.float32),
        grid_spec=pltpu.PrefetchScalarGridSpec(
            num_scalar_prefetch=0,
            grid=grid,
            in_specs=[
                _spec((TM, tk), lambda i, k: (i, k), ADJ_BUFFERS, hints),  # int8 adjacency counts
                pl.BlockSpec((tk, LANE), lambda i, k: (k, 0)),             # h1 @ W2_agg stream
                pl.BlockSpec((TM, LANE), lambda i, k: (i, 0)),             # h1 self features
                _spec((LANE, LANE), lambda i, k: (0, 0), 1, hints),        # W2_self   (invariant)
                _spec((1, LANE), lambda i, k: (0, 0), 1, hints),           # b2
                _spec((LANE, LANE), lambda i, k: (0, 0), 1, hints),        # lin1 W
                _spec((1, LANE), lambda i, k: (0, 0), 1, hints),           # lin1 b
                _spec((LANE, LANE), lambda i, k: (0, 0), 1, hints),        # lin2 W (fout padded)
                _spec((1, LANE), lambda i, k: (0, 0), 1, hints),           # lin2 b
                pl.BlockSpec((TM, 1), lambda i, k: (i, 0)),                # 1/deg
            ],
            out_specs=pl.BlockSpec((TM, LANE), lambda i, k: (i, 0)),
            scratch_shapes=[pltpu.VMEM((TM, LANE), jnp.float32)],
        ),
        compiler_params=_compiler_params(),
    )(a_counts, h1w2, h1, w2s, b2, w3, b3, w4, b4, inv_deg)


# ---------------------------------------------------------------------------
# One-time graph / parameter preprocessing (item 8: hoisted out of the forward path)
# ---------------------------------------------------------------------------
def _pick_tk(n_pad):
    tk = PAD
    while tk * 2 <= min(n_pad, TK_TARGET) and n_pad % (tk * 2) == 0:
        tk *= 2
    return tk


def prepare_graph(edge_index, num_nodes):
    """edge_index: (2, E) int32, row 0 = source j, row 1 = target i (PyG flow).

    Builds the padded int8 neighbour-count adjacency plus the f32 1/deg row scale once;
    re-use across forward calls (item 8).
    """
    n_pad = pl.cdiv(num_nodes, PAD) * PAD
    src, dst = edge_index[0], edge_index[1]
    counts = jnp.zeros((n_pad, n_pad), jnp.int32).at[dst, src].add(1)
    deg = counts.sum(axis=1, keepdims=True).astype(jnp.float32)
    inv_deg = 1.0 / jnp.maximum(deg, 1.0)          # mean aggregation; isolated nodes -> 0
    # TODO(synk): int8 counts overflow above 127 parallel edges between one node pair.
    return dict(a_counts=counts.astype(jnp.int8), inv_deg=inv_deg,
                n=num_nodes, n_pad=n_pad, tk=_pick_tk(n_pad))


def _pack_half(w_half, fin, fout):
    wp = jnp.zeros((LANE, LANE), jnp.bfloat16)
    return wp.at[:fin, :fout].set(w_half.T.astype(jnp.bfloat16))


def _pack_bias(b):
    return jnp.zeros((1, LANE), jnp.float32).at[0, :b.shape[0]].set(b.astype(jnp.float32))


def pack_params(params):
    """SAGEConvCat's lin_l acts on cat([x_self, mean_agg]) -> self half = w[:, :fin]."""
    f0 = params["conv1_w"].shape[1] // 2
    h1d = params["conv1_w"].shape[0]
    h2d = params["conv2_w"].shape[0]
    return dict(
        f0=f0,
        w1s=_pack_half(params["conv1_w"][:, :f0], f0, h1d),
        w1a=_pack_half(params["conv1_w"][:, f0:], f0, h1d),
        b1=_pack_bias(params["conv1_b"]),
        w2s=_pack_half(params["conv2_w"][:, :h1d], h1d, h2d),
        w2a=_pack_half(params["conv2_w"][:, h1d:], h1d, h2d),
        b2=_pack_bias(params["conv2_b"]),
        w3=_pack_half(params["lin1_w"], params["lin1_w"].shape[1], params["lin1_w"].shape[0]),
        b3=_pack_bias(params["lin1_b"]),
        w4=_pack_half(params["lin2_w"], params["lin2_w"].shape[1], params["lin2_w"].shape[0]),
        b4=_pack_bias(params["lin2_b"]),
    )


# ---------------------------------------------------------------------------
# Forward pass
# ---------------------------------------------------------------------------
def _forward_impl(graph, packed, x, hints):
    n, n_pad, tk = graph["n"], graph["n_pad"], graph["tk"]
    f0 = packed["f0"]
    x_pad = jnp.zeros((n_pad, LANE), jnp.bfloat16).at[:n, :f0].set(x.astype(jnp.bfloat16))
    # item 7: hoist the aggregation-half weight; the kernel streams A @ (X @ W1_agg).
    xw1 = jnp.dot(x_pad, packed["w1a"],
                  preferred_element_type=jnp.float32).astype(jnp.bfloat16)

    h1, h1w2 = _sage_first_layer(graph["a_counts"], xw1, x_pad, packed["w1s"],
                                 packed["b1"], packed["w2a"], graph["inv_deg"], tk, hints)
    # TODO(synk): training-mode dropout (p=0.5) between conv stack and linear head is not
    # implemented; this is the inference path.
    out = _sage_tail_fused(graph["a_counts"], h1w2, h1, packed["w2s"], packed["b2"],
                           packed["w3"], packed["b3"], packed["w4"], packed["b4"],
                           graph["inv_deg"], tk, hints)
    return out[:n, 0]                                  # num_classes=1 -> squeeze


def gcn_regression_forward(graph, packed, x, train_status=False):
    del train_status  # inference path only (see TODO above)
    if _PIPELINE_HINTS_OK[0]:
        try:
            return jax.block_until_ready(_forward_impl(graph, packed, x, hints=True))
        except Exception:
            # This JAX build rejects pipeline_mode hints; fall back to default buffering.
            _PIPELINE_HINTS_OK[0] = False
    return _forward_impl(graph, packed, x, hints=False)


# ---------------------------------------------------------------------------
# Pure-JAX reference (mirrors the kernel's bf16-operand / f32-accum numerics and the
# hoisted-weight factorisation agg = (A_counts @ (H @ W_agg)) * (1/deg))
# ---------------------------------------------------------------------------
def gcn_regression_reference(params, x, graph):
    bf16, f32 = jnp.bfloat16, jnp.float32
    n = graph["n"]
    a = graph["a_counts"][:n, :n].astype(bf16)
    inv_deg = graph["inv_deg"][:n]

    def sage(h_bf16, w, b, fin):
        ws = w[:, :fin].T.astype(bf16)
        wa = w[:, fin:].T.astype(bf16)
        hw = jnp.dot(h_bf16, wa, preferred_element_type=f32).astype(bf16)
        agg = jnp.dot(a, hw, preferred_element_type=f32) * inv_deg
        self_t = jnp.dot(h_bf16, ws, preferred_element_type=f32)
        return jnp.maximum(agg + self_t + b, 0.0)

    f0 = params["conv1_w"].shape[1] // 2
    h1d = params["conv1_w"].shape[0]
    h1 = sage(x.astype(bf16), params["conv1_w"], params["conv1_b"], f0).astype(bf16)
    h2 = sage(h1, params["conv2_w"], params["conv2_b"], h1d)
    s1 = jnp.maximum(jnp.dot(h2.astype(bf16), params["lin1_w"].T.astype(bf16),
                             preferred_element_type=f32) + params["lin1_b"], 0.0)
    s2 = jnp.dot(s1.astype(bf16), params["lin2_w"].T.astype(bf16),
                 preferred_element_type=f32) + params["lin2_b"]
    return s2.squeeze()


def init_linear(key, fan_in, fan_out):
    # deterministic stand-in for nn.Linear.reset_parameters (uniform +-1/sqrt(fan_in))
    kw, kb = jax.random.split(key)
    bound = 1.0 / float(fan_in) ** 0.5
    w = jax.random.uniform(kw, (fan_out, fan_in), jnp.float32, -bound, bound)
    b = jax.random.uniform(kb, (fan_out,), jnp.float32, -bound, bound)
    return w, b


if __name__ == "__main__":
    # Model config: num_feat=32, 2 graph-conv layers (sizes [32, 32, 32]),
    # 2 linear layers (sizes [32, 32, 1]), num_classes=1.
    N, F = 200, 32          # N not a multiple of the pad unit -> exercises the padding path
    graph_sizes = [F, 32, 32]
    lin_sizes = [32, 32, 1]
    E = 800

    key = jax.random.PRNGKey(0)
    kx, ke1, ke2, k1, k2, k3, k4 = jax.random.split(key, 7)

    x = jax.random.normal(kx, (N, F), jnp.float32)
    edge_index = jnp.stack([
        jax.random.randint(ke1, (E,), 0, N, jnp.int32),   # source nodes j
        jax.random.randint(ke2, (E,), 0, N, jnp.int32),   # target nodes i
    ])

    c1w, c1b = init_linear(k1, graph_sizes[0] * 2, graph_sizes[1])
    c2w, c2b = init_linear(k2, graph_sizes[1] * 2, graph_sizes[2])
    l1w, l1b = init_linear(k3, lin_sizes[0], lin_sizes[1])
    l2w, l2b = init_linear(k4, lin_sizes[1], lin_sizes[2])
    params = dict(conv1_w=c1w, conv1_b=c1b, conv2_w=c2w, conv2_b=c2b,
                  lin1_w=l1w, lin1_b=l1b, lin2_w=l2w, lin2_b=l2b)

    graph = prepare_graph(edge_index, N)     # one-time adjacency preprocessing (item 8)
    packed = pack_params(params)             # one-time parameter packing

    scores = gcn_regression_forward(graph, packed, x, train_status=False)
    scores = jax.block_until_ready(scores)

    ref = gcn_regression_reference(params, x, graph)
    assert scores.shape == (N,), scores.shape
    assert jnp.allclose(scores, ref, atol=2e-3, rtol=2e-3), "mismatch vs reference"

    print("KERNEL_OK")
</pallas_src>

<mosaic_0001>
module attributes {stable_mosaic.version = 11 : i64} {
  func.func @_conv1_kernel(%arg0: i32, %arg1: i32, %arg2: memref<128x512xi8, #tpu.memory_space<vmem>>, %arg3: memref<512x128xbf16, #tpu.memory_space<vmem>>, %arg4: memref<128x128xbf16, #tpu.memory_space<vmem>>, %arg5: memref<128x128xbf16, #tpu.memory_space<vmem>>, %arg6: memref<1x128xf32, #tpu.memory_space<vmem>>, %arg7: memref<128x128xbf16, #tpu.memory_space<vmem>>, %arg8: memref<128x1xf32, #tpu.memory_space<vmem>>, %arg9: memref<128x128xbf16, #tpu.memory_space<vmem>>, %arg10: memref<128x128xbf16, #tpu.memory_space<vmem>>, %arg11: memref<128x128xf32, #tpu.memory_space<vmem>>) attributes {dimension_semantics = [#tpu.dimension_semantics<parallel>, #tpu.dimension_semantics<arbitrary>], iteration_bounds = array<i64: 4, 1>, scalar_prefetch = 0 : i64, scratch_operands = 1 : i64, tpu.core_type = #tpu.core_type<tc>, window_params = [{transform_indices = @transform_0, window_bounds = array<i64: 128, 512>}, {transform_indices = @transform_1, window_bounds = array<i64: 512, 128>}, {transform_indices = @transform_2, window_bounds = array<i64: 128, 128>}, {pipeline_mode = #tpu.pipeline_mode<synchronous>, transform_indices = @transform_3, window_bounds = array<i64: 128, 128>}, {pipeline_mode = #tpu.pipeline_mode<synchronous>, transform_indices = @transform_4, window_bounds = array<i64: 1, 128>}, {pipeline_mode = #tpu.pipeline_mode<synchronous>, transform_indices = @transform_5, window_bounds = array<i64: 128, 128>}, {transform_indices = @transform_6, window_bounds = array<i64: 128, 1>}, {transform_indices = @transform_7, window_bounds = array<i64: 128, 128>}, {transform_indices = @transform_8, window_bounds = array<i64: 128, 128>}]} {
    %c0_i32 = arith.constant 0 : i32
    %0 = arith.cmpi eq, %arg1, %c0_i32 : i32
    %1 = arith.extui %0 : i1 to i32
    %c0_i32_0 = arith.constant 0 : i32
    %2 = arith.cmpi ne, %1, %c0_i32_0 : i32
    scf.if %2 {
      %cst_10 = arith.constant 0.000000e+00 : f32
      %13 = vector.broadcast %cst_10 : f32 to vector<128x128xf32>
      %c0_11 = arith.constant 0 : index
      %c0_12 = arith.constant 0 : index
      %14 = vector.load %arg11[%c0_11, %c0_12] : memref<128x128xf32, #tpu.memory_space<vmem>>, vector<128x128xf32>
      tpu.vector_store %arg11[%c0_11, %c0_12], %13 {strides = array<i32>} : memref<128x128xf32, #tpu.memory_space<vmem>>, vector<128x128xf32>,
    } else {
    }
    %c0 = arith.constant 0 : index
    %c0_1 = arith.constant 0 : index
    %3 = vector.load %arg2[%c0, %c0_1] : memref<128x512xi8, #tpu.memory_space<vmem>>, vector<128x512xi8>
    %4 = arith.sitofp %3 : vector<128x512xi8> to vector<128x512xbf16>
    %c0_2 = arith.constant 0 : index
    %c0_3 = arith.constant 0 : index
    %5 = vector.load %arg11[%c0_2, %c0_3] : memref<128x128xf32, #tpu.memory_space<vmem>>, vector<128x128xf32>
    %c0_4 = arith.constant 0 : index
    %c0_5 = arith.constant 0 : index
    %6 = vector.load %arg3[%c0_4, %c0_5] : memref<512x128xbf16, #tpu.memory_space<vmem>>, vector<512x128xbf16>
    %cst = arith.constant dense<0.000000e+00> : vector<128x128xf32>
    %7 = tpu.matmul %4, %6, %cst {dimension_numbers = #tpu.dot_dimension_numbers<[1], [0], [0], [1], [0, 0, 1, 1], [], []>} : vector<128x512xbf16>, vector<512x128xbf16>, vector<128x128xf32> -> vector<128x128xf32>
    %8 = arith.addf %5, %7 : vector<128x128xf32>
    %c0_6 = arith.constant 0 : index
    %c0_7 = arith.constant 0 : index
    %9 = vector.load %arg11[%c0_6, %c0_7] : memref<128x128xf32, #tpu.memory_space<vmem>>, vector<128x128xf32>
    tpu.vector_store %arg11[%c0_6, %c0_7], %8 {strides = array<i32>} : memref<128x128xf32, #tpu.memory_space<vmem>>, vector<128x128xf32>,
    %c0_i32_8 = arith.constant 0 : i32
    %10 = arith.cmpi eq, %arg1, %c0_i32_8 : i32
    %11 = arith.extui %10 : i1 to i32
    %c0_i32_9 = arith.constant 0 : i32
    %12 = arith.cmpi ne, %11, %c0_i32_9 : i32
    scf.if %12 {
      %c0_10 = arith.constant 0 : index
      %c0_11 = arith.constant 0 : index
      %13 = vector.load %arg11[%c0_10, %c0_11] : memref<128x128xf32, #tpu.memory_space<vmem>>, vector<128x128xf32>
      %c0_12 = arith.constant 0 : index
      %c0_13 = arith.constant 0 : index
      %14 = vector.load %arg8[%c0_12, %c0_13] : memref<128x1xf32, #tpu.memory_space<vmem>>, vector<128x1xf32>
      %15 = vector.broadcast %14 : vector<128x1xf32> to vector<128x128xf32>
      %16 = arith.mulf %13, %15 : vector<128x128xf32>
      %c0_14 = arith.constant 0 : index
      %c0_15 = arith.constant 0 : index
      %17 = vector.load %arg4[%c0_14, %c0_15] : memref<128x128xbf16, #tpu.memory_space<vmem>>, vector<128x128xbf16>
      %c0_16 = arith.constant 0 : index
      %c0_17 = arith.constant 0 : index
      %18 = vector.load %arg5[%c0_16, %c0_17] : memref<128x128xbf16, #tpu.memory_space<vmem>>, vector<128x128xbf16>
      %cst_18 = arith.constant dense<0.000000e+00> : vector<128x128xf32>
      %19 = tpu.matmul %17, %18, %cst_18 {dimension_numbers = #tpu.dot_dimension_numbers<[1], [0], [0], [1], [0, 0, 1, 1], [], []>} : vector<128x128xbf16>, vector<128x128xbf16>, vector<128x128xf32> -> vector<128x128xf32>
      %20 = arith.addf %16, %19 : vector<128x128xf32>
      %c0_19 = arith.constant 0 : index
      %c0_20 = arith.constant 0 : index
      %21 = vector.load %arg6[%c0_19, %c0_20] : memref<1x128xf32, #tpu.memory_space<vmem>>, vector<1x128xf32>
      %22 = vector.broadcast %21 : vector<1x128xf32> to vector<128x128xf32>
      %23 = arith.addf %20, %22 : vector<128x128xf32>
      %cst_21 = arith.constant 0.000000e+00 : f32
      %24 = vector.broadcast %cst_21 : f32 to vector<128x128xf32>
      %25 = arith.maximumf %23, %24 : vector<128x128xf32>
      %26 = arith.truncf %25 : vector<128x128xf32> to vector<128x128xbf16>
      %c0_22 = arith.constant 0 : index
      %c0_23 = arith.constant 0 : index
      %27 = vector.load %arg9[%c0_22, %c0_23] : memref<128x128xbf16, #tpu.memory_space<vmem>>, vector<128x128xbf16>
      tpu.vector_store %arg9[%c0_22, %c0_23], %26 {strides = array<i32>} : memref<128x128xbf16, #tpu.memory_space<vmem>>, vector<128x128xbf16>,
      %c0_24 = arith.constant 0 : index
      %c0_25 = arith.constant 0 : index
      %28 = vector.load %arg7[%c0_24, %c0_25] : memref<128x128xbf16, #tpu.memory_space<vmem>>, vector<128x128xbf16>
      %cst_26 = arith.constant dense<0.000000e+00> : vector<128x128xf32>
      %29 = tpu.matmul %26, %28, %cst_26 {dimension_numbers = #tpu.dot_dimension_numbers<[1], [0], [0], [1], [0, 0, 1, 1], [], []>} : vector<128x128xbf16>, vector<128x128xbf16>, vector<128x128xf32> -> vector<128x128xf32>
      %30 = arith.truncf %29 : vector<128x128xf32> to vector<128x128xbf16>
      %c0_27 = arith.constant 0 : index
      %c0_28 = arith.constant 0 : index
      %31 = vector.load %arg10[%c0_27, %c0_28] : memref<128x128xbf16, #tpu.memory_space<vmem>>, vector<128x128xbf16>
      tpu.vector_store %arg10[%c0_27, %c0_28], %30 {strides = array<i32>} : memref<128x128xbf16, #tpu.memory_space<vmem>>, vector<128x128xbf16>,
    } else {
    }
    return
  }
  func.func @transform_0(%arg0: i32, %arg1: i32) -> (i32, i32) {
    %c0_i32 = arith.constant 0 : i32
    return %arg0, %arg1 : i32, i32
  }
  func.func @transform_1(%arg0: i32, %arg1: i32) -> (i32, i32) {
    %c0_i32 = arith.constant 0 : i32
    %c0_i32_0 = arith.constant 0 : i32
    return %arg1, %c0_i32 : i32, i32
  }
  func.func @transform_2(%arg0: i32, %arg1: i32) -> (i32, i32) {
    %c0_i32 = arith.constant 0 : i32
    %c0_i32_0 = arith.constant 0 : i32
    return %arg0, %c0_i32 : i32, i32
  }
  func.func @transform_3(%arg0: i32, %arg1: i32) -> (i32, i32) {
    %c0_i32 = arith.constant 0 : i32
    %c0_i32_0 = arith.constant 0 : i32
    %c0_i32_1 = arith.constant 0 : i32
    return %c0_i32, %c0_i32_0 : i32, i32
  }
  func.func @transform_4(%arg0: i32, %arg1: i32) -> (i32, i32) {
    %c0_i32 = arith.constant 0 : i32
    %c0_i32_0 = arith.constant 0 : i32
    %c0_i32_1 = arith.constant 0 : i32
    return %c0_i32, %c0_i32_0 : i32, i32
  }
  func.func @transform_5(%arg0: i32, %arg1: i32) -> (i32, i32) {
    %c0_i32 = arith.constant 0 : i32
    %c0_i32_0 = arith.constant 0 : i32
    %c0_i32_1 = arith.constant 0 : i32
    return %c0_i32, %c0_i32_0 : i32, i32
  }
  func.func @transform_6(%arg0: i32, %arg1: i32) -> (i32, i32) {
    %c0_i32 = arith.constant 0 : i32
    %c0_i32_0 = arith.constant 0 : i32
    return %arg0, %c0_i32 : i32, i32
  }
  func.func @transform_7(%arg0: i32, %arg1: i32) -> (i32, i32) {
    %c0_i32 = arith.constant 0 : i32
    %c0_i32_0 = arith.constant 0 : i32
    return %arg0, %c0_i32 : i32, i32
  }
  func.func @transform_8(%arg0: i32, %arg1: i32) -> (i32, i32) {
    %c0_i32 = arith.constant 0 : i32
    %c0_i32_0 = arith.constant 0 : i32
    return %arg0, %c0_i32 : i32, i32
  }
}

module attributes {stable_mosaic.version = 11 : i64} {
  func.func @_conv1_kernel(%arg0: i32, %arg1: i32, %arg2: memref<128x512xi8, #tpu.memory_space<vmem>>, %arg3: memref<512x128xbf16, #tpu.memory_space<vmem>>, %arg4: memref<128x128xbf16, #tpu.memory_space<vmem>>, %arg5: memref<128x128xbf16, #tpu.memory_space<vmem>>, %arg6: memref<1x128xf32, #tpu.memory_space<vmem>>, %arg7: memref<128x128xbf16, #tpu.memory_space<vmem>>, %arg8: memref<128x1xf32, #tpu.memory_space<vmem>>, %arg9: memref<128x128xbf16, #tpu.memory_space<vmem>>, %arg10: memref<128x128xbf16, #tpu.memory_space<vmem>>, %arg11: memref<128x128xf32, #tpu.memory_space<vmem>>) attributes {dimension_semantics = [#tpu.dimension_semantics<parallel>, #tpu.dimension_semantics<arbitrary>], iteration_bounds = array<i64: 4, 1>, scalar_prefetch = 0 : i64, scratch_operands = 1 : i64, tpu.core_type = #tpu.core_type<tc>, window_params = [{transform_indices = @transform_0, window_bounds = array<i64: 128, 512>}, {transform_indices = @transform_1, window_bounds = array<i64: 512, 128>}, {transform_indices = @transform_2, window_bounds = array<i64: 128, 128>}, {pipeline_mode = #tpu.pipeline_mode<synchronous>, transform_indices = @transform_3, window_bounds = array<i64: 128, 128>}, {pipeline_mode = #tpu.pipeline_mode<synchronous>, transform_indices = @transform_4, window_bounds = array<i64: 1, 128>}, {pipeline_mode = #tpu.pipeline_mode<synchronous>, transform_indices = @transform_5, window_bounds = array<i64: 128, 128>}, {transform_indices = @transform_6, window_bounds = array<i64: 128, 1>}, {transform_indices = @transform_7, window_bounds = array<i64: 128, 128>}, {transform_indices = @transform_8, window_bounds = array<i64: 128, 128>}]} {
    %c0_i32 = arith.constant 0 : i32
    %0 = arith.cmpi eq, %arg1, %c0_i32 : i32
    %1 = arith.extui %0 : i1 to i32
    %c0_i32_0 = arith.constant 0 : i32
    %2 = arith.cmpi ne, %1, %c0_i32_0 : i32
    scf.if %2 {
      %cst_10 = arith.constant 0.000000e+00 : f32
      %13 = vector.broadcast %cst_10 : f32 to vector<128x128xf32>
      %c0_11 = arith.constant 0 : index
      %c0_12 = arith.constant 0 : index
      %14 = vector.load %arg11[%c0_11, %c0_12] : memref<128x128xf32, #tpu.memory_space<vmem>>, vector<128x128xf32>
      tpu.vector_store %arg11[%c0_11, %c0_12], %13 {strides = array<i32>} : memref<128x128xf32, #tpu.memory_space<vmem>>, vector<128x128xf32>,
    } else {
    }
    %c0 = arith.constant 0 : index
    %c0_1 = arith.constant 0 : index
    %3 = vector.load %arg2[%c0, %c0_1] : memref<128x512xi8, #tpu.memory_space<vmem>>, vector<128x512xi8>
    %4 = arith.sitofp %3 : vector<128x512xi8> to vector<128x512xbf16>
    %c0_2 = arith.constant 0 : index
    %c0_3 = arith.constant 0 : index
    %5 = vector.load %arg11[%c0_2, %c0_3] : memref<128x128xf32, #tpu.memory_space<vmem>>, vector<128x128xf32>
    %c0_4 = arith.constant 0 : index
    %c0_5 = arith.constant 0 : index
    %6 = vector.load %arg3[%c0_4, %c0_5] : memref<512x128xbf16, #tpu.memory_space<vmem>>, vector<512x128xbf16>
    %cst = arith.constant dense<0.000000e+00> : vector<128x128xf32>
    %7 = tpu.matmul %4, %6, %cst {dimension_numbers = #tpu.dot_dimension_numbers<[1], [0], [0], [1], [0, 0, 1, 1], [], []>} : vector<128x512xbf16>, vector<512x128xbf16>, vector<128x128xf32> -> vector<128x128xf32>
    %8 = arith.addf %5, %7 : vector<128x128xf32>
    %c0_6 = arith.constant 0 : index
    %c0_7 = arith.constant 0 : index
    %9 = vector.load %arg11[%c0_6, %c0_7] : memref<128x128xf32, #tpu.memory_space<vmem>>, vector<128x128xf32>
    tpu.vector_store %arg11[%c0_6, %c0_7], %8 {strides = array<i32>} : memref<128x128xf32, #tpu.memory_space<vmem>>, vector<128x128xf32>,
    %c0_i32_8 = arith.constant 0 : i32
    %10 = arith.cmpi eq, %arg1, %c0_i32_8 : i32
    %11 = arith.extui %10 : i1 to i32
    %c0_i32_9 = arith.constant 0 : i32
    %12 = arith.cmpi ne, %11, %c0_i32_9 : i32
    scf.if %12 {
      %c0_10 = arith.constant 0 : index
      %c0_11 = arith.constant 0 : index
      %13 = vector.load %arg11[%c0_10, %c0_11] : memref<128x128xf32, #tpu.memory_space<vmem>>, vector<128x128xf32>
      %c0_12 = arith.constant 0 : index
      %c0_13 = arith.constant 0 : index
      %14 = vector.load %arg8[%c0_12, %c0_13] : memref<128x1xf32, #tpu.memory_space<vmem>>, vector<128x1xf32>
      %15 = vector.broadcast %14 : vector<128x1xf32> to vector<128x128xf32>
      %16 = arith.mulf %13, %15 : vector<128x128xf32>
      %c0_14 = arith.constant 0 : index
      %c0_15 = arith.constant 0 : index
      %17 = vector.load %arg4[%c0_14, %c0_15] : memref<128x128xbf16, #tpu.memory_space<vmem>>, vector<128x128xbf16>
      %c0_16 = arith.constant 0 : index
      %c0_17 = arith.constant 0 : index
      %18 = vector.load %arg5[%c0_16, %c0_17] : memref<128x128xbf16, #tpu.memory_space<vmem>>, vector<128x128xbf16>
      %cst_18 = arith.constant dense<0.000000e+00> : vector<128x128xf32>
      %19 = tpu.matmul %17, %18, %cst_18 {dimension_numbers = #tpu.dot_dimension_numbers<[1], [0], [0], [1], [0, 0, 1, 1], [], []>} : vector<128x128xbf16>, vector<128x128xbf16>, vector<128x128xf32> -> vector<128x128xf32>
      %20 = arith.addf %16, %19 : vector<128x128xf32>
      %c0_19 = arith.constant 0 : index
      %c0_20 = arith.constant 0 : index
      %21 = vector.load %arg6[%c0_19, %c0_20] : memref<1x128xf32, #tpu.memory_space<vmem>>, vector<1x128xf32>
      %22 = vector.broadcast %21 : vector<1x128xf32> to vector<128x128xf32>
      %23 = arith.addf %20, %22 : vector<128x128xf32>
      %cst_21 = arith.constant 0.000000e+00 : f32
      %24 = vector.broadcast %cst_21 : f32 to vector<128x128xf32>
      %25 = arith.maximumf %23, %24 : vector<128x128xf32>
      %26 = arith.truncf %25 : vector<128x128xf32> to vector<128x128xbf16>
      %c0_22 = arith.constant 0 : index
      %c0_23 = arith.constant 0 : index
      %27 = vector.load %arg9[%c0_22, %c0_23] : memref<128x128xbf16, #tpu.memory_space<vmem>>, vector<128x128xbf16>
      tpu.vector_store %arg9[%c0_22, %c0_23], %26 {strides = array<i32>} : memref<128x128xbf16, #tpu.memory_space<vmem>>, vector<128x128xbf16>,
      %c0_24 = arith.constant 0 : index
      %c0_25 = arith.constant 0 : index
      %28 = vector.load %arg7[%c0_24, %c0_25] : memref<128x128xbf16, #tpu.memory_space<vmem>>, vector<128x128xbf16>
      %cst_26 = arith.constant dense<0.000000e+00> : vector<128x128xf32>
      %29 = tpu.matmul %26, %28, %cst_26 {dimension_numbers = #tpu.dot_dimension_numbers<[1], [0], [0], [1], [0, 0, 1, 1], [], []>} : vector<128x128xbf16>, vector<128x128xbf16>, vector<128x128xf32> -> vector<128x128xf32>
      %30 = arith.truncf %29 : vector<128x128xf32> to vector<128x128xbf16>
      %c0_27 = arith.constant 0 : index
      %c0_28 = arith.constant 0 : index
      %31 = vector.load %arg10[%c0_27, %c0_28] : memref<128x128xbf16, #tpu.memory_space<vmem>>, vector<128x128xbf16>
      tpu.vector_store %arg10[%c0_27, %c0_28], %30 {strides = array<i32>} : memref<128x128xbf16, #tpu.memory_space<vmem>>, vector<128x128xbf16>,
    } else {
    }
    return
  }
  func.func @transform_0(%arg0: i32, %arg1: i32) -> (i32, i32) {
    %c0_i32 = arith.constant 0 : i32
    return %arg0, %arg1 : i32, i32
  }
  func.func @transform_1(%arg0: i32, %arg1: i32) -> (i32, i32) {
    %c0_i32 = arith.constant 0 : i32
    %c0_i32_0 = arith.constant 0 : i32
    return %arg1, %c0_i32 : i32, i32
  }
  func.func @transform_2(%arg0: i32, %arg1: i32) -> (i32, i32) {
    %c0_i32 = arith.constant 0 : i32
    %c0_i32_0 = arith.constant 0 : i32
    return %arg0, %c0_i32 : i32, i32
  }
  func.func @transform_3(%arg0: i32, %arg1: i32) -> (i32, i32) {
    %c0_i32 = arith.constant 0 : i32
    %c0_i32_0 = arith.constant 0 : i32
    %c0_i32_1 = arith.constant 0 : i32
    return %c0_i32, %c0_i32_0 : i32, i32
  }
  func.func @transform_4(%arg0: i32, %arg1: i32) -> (i32, i32) {
    %c0_i32 = arith.constant 0 : i32
    %c0_i32_0 = arith.constant 0 : i32
    %c0_i32_1 = arith.constant 0 : i32
    return %c0_i32, %c0_i32_0 : i32, i32
  }
  func.func @transform_5(%arg0: i32, %arg1: i32) -> (i32, i32) {
    %c0_i32 = arith.constant 0 : i32
    %c0_i32_0 = arith.constant 0 : i32
    %c0_i32_1 = arith.constant 0 : i32
    return %c0_i32, %c0_i32_0 : i32, i32
  }
  func.func @transform_6(%arg0: i32, %arg1: i32) -> (i32, i32) {
    %c0_i32 = arith.constant 0 : i32
    %c0_i32_0 = arith.constant 0 : i32
    return %arg0, %c0_i32 : i32, i32
  }
  func.func @transform_7(%arg0: i32, %arg1: i32) -> (i32, i32) {
    %c0_i32 = arith.constant 0 : i32
    %c0_i32_0 = arith.constant 0 : i32
    return %arg0, %c0_i32 : i32, i32
  }
  func.func @transform_8(%arg0: i32, %arg1: i32) -> (i32, i32) {
    %c0_i32 = arith.constant 0 : i32
    %c0_i32_0 = arith.constant 0 : i32
    return %arg0, %c0_i32 : i32, i32
  }
}

</mosaic_0001>

<bundles_post_ra>
// kernel: tpu_custom_call.1
= control target key start
LH: loop header
LB: loop body
LE: loop exit
PB: predicated region body
PF: predicated region fallthrough
CT: control target
= control target key end

     0   :  { %s3351_s0 = inlined_call_operand.vmem [shape: s8[512,512], index: 0, kind: input, shape index: {}]   ;;  %s3352_s1 = inlined_call_operand.hbm [shape: bf16[512,128], index: 1, kind: input, shape index: {}]   ;;  %s3353_s2 = inlined_call_operand.hbm [shape: bf16[512,128], index: 2, kind: input, shape index: {}]   ;;  %s3354_s3 = inlined_call_operand.hbm [shape: bf16[128,128], index: 3, kind: input, shape index: {}]   ;;  %s3355_s4 = inlined_call_operand.vmem [shape: f32[1,128], index: 4, kind: input, shape index: {}]   ;;  %s3356_s5 = inlined_call_operand.hbm [shape: bf16[128,128], index: 5, kind: input, shape index: {}]   ;;  %s3357_s6 = inlined_call_operand.vmem [shape: f32[512,1], index: 6, kind: input, shape index: {}]   ;;  %s3358_s7 = inlined_call_operand.hbm [shape: bf16[512,128], index: 7, kind: output, shape index: {0}]   ;;  %s3359_s8 = inlined_call_operand.hbm [shape: bf16[512,128], index: 8, kind: output, shape index: {1}]  }
   0x1   :  { %3367 = sst [smem:[#allocation27_spill]] %s3352_s1 }
   0x2   :  { %3368 = sst [smem:[#allocation28_spill]] %s3354_s3 }
   0x3   :  { %3369 = sst [smem:[#allocation29_spill]] %s3356_s5 }
   0x4   :  { %3370 = sst [smem:[#allocation30_spill]] %s3359_s8 }
   0x5   :  { %14 = vsyncpa [#allocation4], 0 }
   0x6   :  { %15 = vsyncpa [#allocation7], 0 }
   0x7   :  { %17 = vsyncpa [#allocation7 + $0x1], 0 }
   0x8   :  { %18 = vsyncpa [#allocation10], 0 }
   0x9   :  { %19 = vsyncpa [#allocation5], 0 }
   0xa   :  { %21 = vsyncpa [#allocation5 + $0x1], 0 }
   0xb   :  { %22 = vsyncpa [#allocation13], 0 }
   0xc   :  { %24 = vsyncpa [#allocation13 + $0x1], 0  ;;  %s2896_s27 = smov 0   ;;  %s2898_s28 = smov 0  }
   0xd   :  { %s2900_s29 = smov 0   ;;  %s2902_s30 = smov 0  }
   0xe   :  { %s2904_s9 = smov 0   ;;  %s2906_s10 = smov 0  }
   0xf LB: > { %3371 = sst [smem:[#allocation20_spill]] %s2818_s27  ;;  %s2927_s11 = sadd.s32 4294967295, %s2838_s10   ;;  %s2838_s10 = sphi %s2906_s10, %s30_s10   ;;  %s2834_s9 = sphi %s2904_s9, %s3410_s9   ;;  %s2830_s30 = sphi %s2902_s30, %s3409_s30   ;;  %s2826_s29 = sphi %s2900_s29, %s3408_s29   ;;  %s2822_s28 = sphi %s2898_s28, %s3407_s28   ;;  %s2818_s27 = sphi %s2896_s27, %s3406_s27  }
  0x10   : > { %s1977_s12 = sadd.s32 4294967294, %s2838_s10   ;;  %p110_p0 = scmp.ne.s32.totalorder %s2826_s29, %s2822_s28 }
  0x11   : > { %p111_p1 = scmp.eq.s32.totalorder %s2838_s10, 0  ;;  %p116_p2 = scmp.ne.s32.totalorder %s2822_s28, %s2818_s27 }
  0x12   : > { %p3360_p3 = scmp.eq.s32.totalorder %s2927_s11, 0  ;;  %p229_p5 = scmp.eq.s32.totalorder %s2927_s11, 3 }
  0x13   : > { %p2936_p4 = por %p111_p1, %p110_p0  ;;  %p235_p7 = scmp.eq.s32.totalorder %s1977_s12, 3 }
  0x14   : > { %p2943_p6 = por %p3360_p3, %p116_p2  ;;  %p2947_p8 = por %p229_p5, %p110_p0 }
  0x15   : > { %p1978_p9 = scmp.ge.s32.totalorder %s2838_s10, 1  ;;  %p2952_p10 = por %p235_p7, %p116_p2 }
  0x16   : > { %s3374_s15 = scalar_select %p2947_p8, 1, 0 }
  0x17   : > { %s3375_s16 = scalar_select %p2952_p10, 1, 0 }
  0x18   : > { %p268_p11 = scmp.lt.s32.totalorder %s2838_s10, 5  ;;  %s2840_s18 = smov [#allocation8]  }
  0x19   : > { %3376 = sst [smem:[#allocation21_spill]] %s3375_s16  ;;  %s296_s19 = sshll.u32 %s2840_s18, 4  ;;  %s297_s19 = int_to_ptr.vmem [resolvable:$true] %s296_s19 }
  0x1a   : > { %p2957_p12 = pnand %p1978_p9, %p268_p11  ;;  %p2491_p0 = scmp.lt.s32.totalorder %s2838_s10, 4 }
  0x1b   : > { %s2621_s22 = scalar_lea.vmem %s297_s19, 1024  ;;  %p2629_p10 = scmp.lt.s32.totalorder %s297_s19, %s297_s19 }
  0x1c   : > { %p2467_p13 = pneg %p2957_p12  ;;  %p2972_p2 = pnand %p2491_p0, %p2936_p4 }
  0x1d   : > { %p2622_p7 = scmp.ne.s32.totalorder %s297_s19, %s2621_s22 }
  0x1e   : > { %p2966_p1 = pnand %p2467_p13, %p3360_p3  ;;  %p2630_p13 = scmp.lt.s32.totalorder %s2621_s22, %s2621_s22 }
  0x20   : > { %p2612_p5 = pneg %p2966_p1  ;;  %p2631_p3 = por %p2630_p13, %p2629_p10 }
  0x22   : > { %p2624_p9 = pnand %p2622_p7, %p2612_p5 }
  0x24   : > { %p2625_p11 = pneg %p2624_p9 }
  0x26   : > { %p2632_p8 = pnand %p2631_p3, %p2625_p11 }
  0x28   : > { %2635 = shalt.err (!%p2632_p8)
}
  0x29   : > { %s3365_s23 = smov 64   ;;  %s3366_s24 = smov 4  }
  0x2a   : > { %s3380_s3 = sld [smem:[#allocation28_spill]]  ;;  %s2843_s12 = smov [#allocation3]  }
  0x2b   : > { %s283_s13 = sshll.u32 %s2843_s12, 4  ;;  %s284_s13 = int_to_ptr.vmem [resolvable:$true] %s283_s13 }
  0x2c   : > { %s2647_s18 = scalar_lea.vmem %s284_s13, 4096  ;;  %p2655_p10 = scmp.lt.s32.totalorder %s284_s13, %s284_s13 }
  0x2d   : > { %p2648_p4 = scmp.ne.s32.totalorder %s284_s13, %s2647_s18  ;;  %p2656_p0 = scmp.lt.s32.totalorder %s2647_s18, %s2647_s18 }
  0x2f   : > { %p2650_p3 = pnand %p2648_p4, %p2612_p5  ;;  %p2657_p7 = por %p2656_p0, %p2655_p10 }
  0x30   : > { %2473 = dma.hbm_to_vmem [thread:$0]  (!%p2966_p1), %s3380_s3, 1024, %s297_s19, [#allocation7], %s3365_s23, %s3365_s23, %s3366_s24  }
  0x31   : > { %p2651_p8 = pneg %p2650_p3 }
  0x33   : > { %p2658_p9 = pnand %p2657_p7, %p2651_p8 }
  0x35   : > { %2661 = shalt.err (!%p2658_p9)
}
  0x36   : > { %s3381_s1 = sld [smem:[#allocation27_spill]]  ;;  %s2844_s25 = smov [#allocation9]  }
  0x37   : > { %s312_s26 = sshll.u32 %s2844_s25, 4  ;;  %s313_s26 = int_to_ptr.vmem [resolvable:$true] %s312_s26 }
  0x38   : > { %s2673_s12 = scalar_lea.vmem %s313_s26, 1024  ;;  %p2681_p3 = scmp.lt.s32.totalorder %s313_s26, %s313_s26 }
  0x39   : > { %p2674_p11 = scmp.ne.s32.totalorder %s313_s26, %s2673_s12  ;;  %p2682_p8 = scmp.lt.s32.totalorder %s2673_s12, %s2673_s12 }
  0x3b   : > { %p2676_p13 = pnand %p2674_p11, %p2612_p5  ;;  %p2683_p10 = por %p2682_p8, %p2681_p3 }
  0x3c   : > { %2470 = dma.hbm_to_vmem [thread:$0]  (!%p2966_p1), %s3381_s1, 4096, %s284_s13, [#allocation4], %s3365_s23, %s3365_s23, %s3366_s24  }
  0x3d   : > { %p2677_p4 = pneg %p2676_p13 }
  0x3f   : > { %p2684_p0 = pnand %p2683_p10, %p2677_p4 }
  0x41   : > { %2687 = shalt.err (!%p2684_p0)
}
  0x42   : > { %s3382_s5 = sld [smem:[#allocation29_spill]]  ;;  %s42_s19 = sadd.s32 1, %s2834_s9 }
  0x43   : > { %p44_p5 = scmp.ge.s32.totalorder %s42_s19, 4  ;;  %s103_s22 = sadd.s32 1, %s2826_s29 }
  0x44   : > { %s341_s25 = sand.u32 1, %s2838_s10   ;;  %s343_s20 = sand.u32 1, %s2826_s29  }
  0x45   : > { %s3412_s19 = smov (%p44_p5, %s42_s19), 0  ;;  %s1983_s12 = sshll.u32 %s343_s20, 6 }
  0x46   : > { %s2095_s1 = sshll.u32 %s2834_s9, 10  ;;  %s100_s13 = ssub.s32 %s2834_s9, %s3412_s19 }
  0x47   : > { %p101_p7 = scmp.eq.s32.totalorder %s100_s13, 0  ;;  %s351_s16 = scalar_lea.hbm %s3353_s2, %s2095_s1 }
  0x48   : > { %2476 = dma.hbm_to_vmem [thread:$0]  (!%p2966_p1), %s3382_s5, 1024, %s313_s26, [#allocation10], %s3365_s23, %s3365_s23, %s3366_s24  }
  0x49   : > { %s345_s27 = scalar_lea.vmem [#allocation6], %s1983_s12  ;;  %s342_s23 = scalar_lea.sflag [#allocation7], %s341_s25 }
  0x4a   : > { %s352_s8 = sshll.u32 %s345_s27, 4  ;;  %p2690_p1 = pneg %p2972_p2  ;;  %s353_s8 = int_to_ptr.vmem [resolvable:$true] %s352_s8 }
  0x4b   : > { %s3024_s26 = scalar_select %p101_p7, %s2826_s29, %s103_s22  }
  0x4c   : > { %s2701_s24 = scalar_lea.vmem %s353_s8, 1024  ;;  %s2845_s20 = smov [#allocation6]  }
  0x4d   : > { %p2702_p9 = scmp.ne.s32.totalorder %s353_s8, %s2701_s24  ;;  %s2706_s5 = sshll.u32 %s2845_s20, 4  ;;  %s2707_s5 = int_to_ptr.vmem [resolvable:$false] %s2706_s5 }
  0x4e   : > { %s2708_s13 = scalar_lea.vmem %s2707_s5, 2048  ;;  %p2709_p4 = scmp.lt.s32.totalorder %s353_s8, %s2707_s5 }
  0x4f   : > { %p2704_p11 = pnand %p2702_p9, %p2690_p1  ;;  %p2710_p3 = scmp.lt.s32.totalorder %s2708_s13, %s2701_s24 }
  0x51   : > { %p2705_p13 = pneg %p2704_p11  ;;  %p2711_p8 = por %p2710_p3, %p2709_p4 }
  0x53   : > { %p2712_p10 = pnand %p2711_p8, %p2705_p13 }
  0x55   : > { %2715 = shalt.err (!%p2712_p10)
}
  0x56   : > { %s3383_s1 = smov 4   ;;  %s3384_s3 = smov 64  }
  0x57   : > { %2480 = dma.hbm_to_vmem [thread:$0]  (!%p2972_p2), %s351_s16, 1024, %s353_s8, %s342_s23, %s3384_s3, %s3384_s3, %s3383_s1  }
  0x58   : > { %373 = sbr.rel (%p2957_p12) target bundleno = 650 (0x28a), region = 48 }
  0x5d   : > { %p3385_p0 = scmp.eq.s32.totalorder %s2927_s11, 0 }
  0x5f   : > { %2793 = dma.done.wait (%p3385_p0), [#allocation4], 4096   ;;  %p3386_p5 = pmov %p3385_p0 }
  0x60   : > { %s379_s5 = sand.u32 1, %s2927_s11   ;;  %s3041_s27 = sand.u32 1, %s2822_s28  }
  0x61   : > { %2795 = vsyncadd (%p3386_p5), [#allocation4], 4294963200  ;;  %s3044_s21 = sshll.u32 %s3041_s27, 6  ;;  %s380_s8 = scalar_lea.sflag [#allocation7], %s379_s5 }
  0x62   : > { %s3047_s16 = scalar_lea.vmem [#allocation6], %s3044_s21 }
  0x63   : > { %2797 = dma.done.wait (%p2943_p6), %s380_s8, 1024  }
  0x64   : > { %2799 = vsyncadd (%p2943_p6), %s380_s8, 4294966272  ;;  %p3387_p12 = pmov %p3385_p0 }
  0x65   : > { %p3388_p2 = pmov %p3385_p0 }
  0x66   : > { %2801 = dma.done.wait (%p3387_p12), [#allocation7], 1024  }
  0x67   : > { %2803 = vsyncadd (%p3388_p2), [#allocation7], 4294966272  ;;  %p3389_p7 = pmov %p3385_p0 }
  0x68   : > { %p3390_p1 = pmov %p3385_p0 }
  0x69   : > { %2805 = dma.done.wait (%p3389_p7), [#allocation10], 1024  }
  0x6a   : > { %2807 = vsyncadd (%p3390_p1), [#allocation10], 4294966272  ;;  %v2846_v0 = vmov 0   ;;  %v2554_v1 = vld [vmem:[#allocation3 + $0x78] sm:$0xff]   ;;  %v2558_v5 = vld [vmem:[#allocation3 + $0x70] sm:$0xff]   ;;  %s1993_s11 = sshll.u32 %s2830_s30, 2 }
  0x6b   : > { %2552 = vset.pattern.permute.xlu0 %v2846_v0  ;;  %2553 = vset.pattern.permute.xlu1 %v2846_v0  ;;  %v2555_v2 = vld [vmem:[#allocation3 + $0xf8] sm:$0xff]   ;;  %v2559_v6 = vld [vmem:[#allocation3 + $0xf0] sm:$0xff]   ;;  %v2562_v9 = vld [vmem:[#allocation3 + $0x68] sm:$0xff]   ;;  %p446_p6 = scmp.lt.s32.totalorder %s1993_s11, 15  ;;  %s1996_s22 = sshll.u32 %s2830_s30, 4 }
  0x6c   : > { %2225 = vmatprep.subr.bf16.mxu0 %v2554_v1  ;;  %v2556_v3 = vld [vmem:[#allocation3 + $0x38] sm:$0xff]   ;;  %2289 = vmatprep.subr.bf16.mxu1 %v2555_v2  ;;  %v2560_v7 = vld [vmem:[#allocation3 + $0x30] sm:$0xff]   ;;  %v2563_v10 = vld [vmem:[#allocation3 + $0xe8] sm:$0xff]   ;;  %p459_p9 = scmp.lt.s32.totalorder %s1996_s22, 63  ;;  %s3213_s3 = scalar_lea.vmem [#allocation11], %s3044_s21 }
  0x6d   : > { %v2557_v4 = vld [vmem:[#allocation3 + $0xb8] sm:$0xff]   ;;  %2226 = vmatpush3.bf16.msra.mxu0 %v2556_v3  ;;  %v2561_v8 = vld [vmem:[#allocation3 + $0xb0] sm:$0xff]   ;;  %v2564_v11 = vld [vmem:[#allocation3 + $0x28] sm:$0xff]   ;;  %s3414_s11 = smov (!%p446_p6, %s1993_s11), 15  ;;  %s2129_s5 = sshll.u32 %s2830_s30, 10 }
  0x6e   : > { %2290 = vmatpush3.bf16.msra.mxu1 %v2557_v4  ;;  %2227 = vmatprep.subr.bf16.mxu0 %v2558_v5  ;;  %v2565_v12 = vld [vmem:[#allocation3 + $0xa8] sm:$0xff]   ;;  %v2566_v13 = vld [vmem:[#allocation3 + $0x60] sm:$0xff]   ;;  %v2570_v17 = vld [vmem:[#allocation3 + $0x58] sm:$0xff]   ;;  %s2096_s14 = sshll.u32 %s3414_s11, 5  ;;  %s3416_s22 = smov (!%p459_p9, %s1996_s22), 63 }
  0x6f   : > { %2291 = vmatprep.subr.bf16.mxu1 %v2559_v6  ;;  %v2567_v14 = vld [vmem:[#allocation3 + $0xe0] sm:$0xff]   ;;  %v2571_v18 = vld [vmem:[#allocation3 + $0xd8] sm:$0xff]   ;;  %v2574_v21 = vld [vmem:[#allocation3 + $0x50] sm:$0xff]   ;;  %s3065_s24 = scalar_lea.vmem %s3351_s0, %s2096_s14  ;;  %s1997_s25 = sshll.u32 %s3416_s22, 3 }
  0x70   : > { %v2568_v15 = vld [vmem:[#allocation3 + $0x20] sm:$0xff]   ;;  %v2572_v19 = vld [vmem:[#allocation3 + $0x18] sm:$0xff]   ;;  %v2575_v22 = vld [vmem:[#allocation3 + $0xd0] sm:$0xff]   ;;  %s3079_s20 = scalar_lea.vmem %s3357_s6, %s1997_s25  ;;  %s1784_s8 = sshll.u32 %s3213_s3, 4  ;;  %s3256_s8 = int_to_ptr.vmem [resolvable:$true] %s1784_s8 }
  0x71   : > { %2228 = vmatpush3.bf16.msra.mxu0 %v2560_v7  ;;  %v2569_v16 = vld [vmem:[#allocation3 + $0xa0] sm:$0xff]   ;;  %v2573_v20 = vld [vmem:[#allocation3 + $0x98] sm:$0xff]   ;;  %v2576_v23 = vld [vmem:[#allocation3 + $0x10] sm:$0xff]   ;;  %s3254_s14 = scalar_lea.hbm %s3358_s7, %s2129_s5  ;;  %s1766_s17 = scalar_lea.sflag [#allocation5], %s3041_s27 }
  0x72   : > { %2292 = vmatpush3.bf16.msra.mxu1 %v2561_v8  ;;  %2229 = vmatprep.subr.bf16.mxu0 %v2562_v9  ;;  %v2577_v24 = vld [vmem:[#allocation3 + $0x90] sm:$0xff]   ;;  %v2578_v25 = vld [vmem:[#allocation3 + $0x48] sm:$0xff]   ;;  %v2582_v29 = vld [vmem:[#allocation3 + $0x40] sm:$0xff]   ;;  %s2716_s23 = scalar_lea.vmem %s3256_s8, 1024  ;;  %p3401_p13 = scmp.ne.s32.totalorder %s3374_s15, 0 }
  0x73   : > { %2293 = vmatprep.subr.bf16.mxu1 %v2563_v10  ;;  %v2579_v26 = vld [vmem:[#allocation3 + $0xc8] sm:$0xff]   ;;  %v2583_v30 = vld [vmem:[#allocation3 + $0xc0] sm:$0xff]   ;;  %v490_v34 = vld [vmem:[%s3065_s24 + $0x18] sm:$0xff]  ;;  %p2717_p11 = scmp.ne.s32.totalorder %s3256_s8, %s2716_s23 }
  0x74   : > { %v2580_v27 = vld [vmem:[#allocation3 + $0x8] sm:$0xff]   ;;  %v2584_v31 = vld [vmem:[#allocation3] sm:$0xff]   ;;  %v506_v38 = vunpack.c.l.s8.bf16 %v490_v34  ;;  %v489_v39 = vld [vmem:[%s3065_s24 + $0x10] sm:$0xff]  ;;  %v510_v40 = vunpack.c.h.s8.bf16 %v490_v34 }
  0x75   : > { %2230 = vmatpush3.bf16.msra.mxu0 %v2564_v11  ;;  %v2581_v28 = vld [vmem:[#allocation3 + $0x88] sm:$0xff]   ;;  %v2585_v32 = vld [vmem:[#allocation3 + $0x80] sm:$0xff]   ;;  %v505_v42 = vunpack.c.l.s8.bf16 %v489_v39  ;;  %v2586_v43 = vld [vmem:[#allocation8 + $0x38] sm:$0xff]   ;;  %v509_v49 = vunpack.c.h.s8.bf16 %v489_v39  ;;  %p2718_p4 = pnand %p2717_p11, %p3401_p13 }
  0x76   : > { %2294 = vmatpush3.bf16.msra.mxu1 %v2565_v12  ;;  %2231 = vmatprep.subr.bf16.mxu0 %v2566_v13  ;;  %v488_v33 = vld [vmem:[%s3065_s24 + $0x8] sm:$0xff]  ;;  %v487_v35 = vld [vmem:[%s3065_s24] sm:$0xff]  ;;  %v2587_v44 = vld [vmem:[#allocation8 + $0x30] sm:$0xff]  }
  0x77   : > { %2295 = vmatprep.subr.bf16.mxu1 %v2567_v14  ;;  %v504_v36 = vunpack.c.l.s8.bf16 %v488_v33  ;;  %v508_v37 = vunpack.c.h.s8.bf16 %v488_v33  ;;  %v503_v41 = vunpack.c.l.s8.bf16 %v487_v35  ;;  %936 = vmatprep.mubr.bf16.mxu1 %v506_v38  ;;  %v492_v45 = vld [vmem:[%s3065_s24 + $0x28] sm:$0xff]  ;;  %v494_v46 = vld [vmem:[%s3065_s24 + $0x38] sm:$0xff]  ;;  %v507_v48 = vunpack.c.h.s8.bf16 %v487_v35  ;;  %v2589_v52 = vld [vmem:[#allocation8 + $0x20] sm:$0xff]   ;;  %p2719_p3 = pneg %p2718_p4 }
  0x78   : > { %v2588_v47 = vld [vmem:[#allocation8 + $0x28] sm:$0xff]   ;;  %v512_v50 = vunpack.c.l.s8.bf16 %v492_v45  ;;  %v514_v51 = vunpack.c.l.s8.bf16 %v494_v46  ;;  %v491_v53 = vld [vmem:[%s3065_s24 + $0x20] sm:$0xff]  ;;  %v493_v54 = vld [vmem:[%s3065_s24 + $0x30] sm:$0xff]  ;;  %v516_v58 = vunpack.c.h.s8.bf16 %v492_v45  ;;  %v518_v59 = vunpack.c.h.s8.bf16 %v494_v46 }
  0x79   : > { %2232 = vmatpush3.bf16.msra.mxu0 %v2568_v15  ;;  %839 = vmatprep.mubr.bf16.mxu0 %v504_v36  ;;  %v2590_v55 = vld [vmem:[#allocation8 + $0x18] sm:$0xff]   ;;  %v511_v56 = vunpack.c.l.s8.bf16 %v491_v53  ;;  %v513_v57 = vunpack.c.l.s8.bf16 %v493_v54  ;;  %v1052_v60 = vld [vmem:[%s3079_s20] sm:$0xff]  ;;  %v2591_v61 = vld [vmem:[#allocation8 + $0x10] sm:$0xff]   ;;  %v515_v4 = vunpack.c.h.s8.bf16 %v491_v53  ;;  %v517_v5 = vunpack.c.h.s8.bf16 %v493_v54 }
  0x7a   : > { %2296 = vmatpush3.bf16.msra.mxu1 %v2569_v16  ;;  %2233 = vmatprep.subr.bf16.mxu0 %v2570_v17  ;;  %v1053_v62 = vld [vmem:[%s3079_s20 + $0x8] sm:$0xff]  ;;  %v1054_v63 = vld [vmem:[%s3079_s20 + $0x10] sm:$0xff]  ;;  %v498_v1 = vld [vmem:[%s3065_s24 + $0x58] sm:$0xff] }
  0x7b   : > { %2297 = vmatprep.subr.bf16.mxu1 %v2571_v18  ;;  %1070 = vperm.xlu0 %2552, %v1052_v60   ;;  %v496_v0 = vld [vmem:[%s3065_s24 + $0x48] sm:$0xff]  ;;  %v1056_v3 = vld [vmem:[%s3079_s20 + $0x20] sm:$0xff]  ;;  %v1055_v6 = vld [vmem:[%s3079_s20 + $0x18] sm:$0xff]  ;;  %v522_v8 = vunpack.c.l.s8.bf16 %v498_v1 }
  0x7c   : > { %v2592_v2 = vld [vmem:[#allocation8 + $0x8] sm:$0xff]   ;;  %1080 = vperm.xlu1 %2553, %v1054_v63   ;;  %v520_v7 = vunpack.c.l.s8.bf16 %v496_v0  ;;  %v2593_v9 = vld [vmem:[#allocation8] sm:$0xff]   ;;  %v1058_v11 = vld [vmem:[%s3079_s20 + $0x30] sm:$0xff]  ;;  %v524_v18 = vunpack.c.h.s8.bf16 %v496_v0 }
  0x7d   : > { %2234 = vmatpush3.bf16.msra.mxu0 %v2572_v19  ;;  %v1057_v10 = vld [vmem:[%s3079_s20 + $0x28] sm:$0xff]  ;;  %v495_v12 = vld [vmem:[%s3065_s24 + $0x40] sm:$0xff]  ;;  %v497_v13 = vld [vmem:[%s3065_s24 + $0x50] sm:$0xff]  ;;  %v526_v19 = vunpack.c.h.s8.bf16 %v498_v1 }
  0x7e   : > { %2298 = vmatpush3.bf16.msra.mxu1 %v2573_v20  ;;  %2235 = vmatprep.subr.bf16.mxu0 %v2574_v21  ;;  %v1060_v14 = vld [vmem:[%s3079_s20 + $0x40] sm:$0xff]  ;;  %v519_v15 = vunpack.c.l.s8.bf16 %v495_v12  ;;  %v521_v16 = vunpack.c.l.s8.bf16 %v497_v13  ;;  %v1059_v17 = vld [vmem:[%s3079_s20 + $0x38] sm:$0xff]  ;;  %v1062_v20 = vld [vmem:[%s3079_s20 + $0x50] sm:$0xff] }
  0x7f   : > { %2299 = vmatprep.subr.bf16.mxu1 %v2575_v22  ;;  %1075 = vperm.xlu0 %2552, %v1053_v62   ;;  %v1061_v21 = vld [vmem:[%s3079_s20 + $0x48] sm:$0xff]  ;;  %v501_v33 = vld [vmem:[%s3065_s24 + $0x70] sm:$0xff]  ;;  %v1067_v36 = vld [vmem:[%s3079_s20 + $0x78] sm:$0xff] }
  0x80   : > { %1085 = vperm.xlu1 %2553, %v1055_v6   ;;  %v500_v22 = vld [vmem:[%s3065_s24 + $0x68] sm:$0xff]  ;;  %v529_v35 = vunpack.c.l.s8.bf16 %v501_v33  ;;  %v2598_v45 = vld [vmem:[%s3047_s16 + $0x20] sm:$0xff]   ;;  %v2606_v53 = vld [vmem:[#allocation9 + $0x18] sm:$0xff]  }
  0x81   : > { %2236 = vmatpush3.bf16.msra.mxu0 %v2576_v23  ;;  %v502_v23 = vld [vmem:[%s3065_s24 + $0x78] sm:$0xff]  ;;  %v2599_v46 = vld [vmem:[%s3047_s16 + $0x28] sm:$0xff]   ;;  %v2607_v54 = vld [vmem:[#allocation9 + $0x10] sm:$0xff]  }
  0x82   : > { %2300 = vmatpush3.bf16.msra.mxu1 %v2577_v24  ;;  %2237 = vmatprep.subr.bf16.mxu0 %v2578_v25  ;;  %v1064_v24 = vld [vmem:[%s3079_s20 + $0x60] sm:$0xff]  ;;  %v523_v25 = vunpack.c.h.s8.bf16 %v495_v12  ;;  %v534_v38 = vunpack.c.h.s8.bf16 %v502_v23 }
  0x83   : > { %2301 = vmatprep.subr.bf16.mxu1 %v2579_v26  ;;  %1090 = vperm.xlu0 %2552, %v1056_v3   ;;  %v525_v26 = vunpack.c.h.s8.bf16 %v497_v13 }
  0x84   : > { %1095 = vperm.xlu1 %2553, %v1057_v10  }
  0x85   : > { %2238 = vmatpush3.bf16.msra.mxu0 %v2580_v27  ;;  %v1063_v27 = vld [vmem:[%s3079_s20 + $0x58] sm:$0xff] }
  0x86   : > { %2302 = vmatpush3.bf16.msra.mxu1 %v2581_v28  ;;  %2239 = vmatprep.subr.bf16.mxu0 %v2582_v29  ;;  %v528_v28 = vunpack.c.l.s8.bf16 %v500_v22  ;;  %v530_v29 = vunpack.c.l.s8.bf16 %v502_v23 }
  0x87   : > { %2303 = vmatprep.subr.bf16.mxu1 %v2583_v30  ;;  %1100 = vperm.xlu0 %2552, %v1058_v11   ;;  %v1066_v30 = vld [vmem:[%s3079_s20 + $0x70] sm:$0xff] }
  0x88   : > { %1105 = vperm.xlu1 %2553, %v1059_v17  }
  0x89   : > { %2240 = vmatpush3.bf16.msra.mxu0 %v2584_v31  ;;  %v1065_v31 = vld [vmem:[%s3079_s20 + $0x68] sm:$0xff] }
  0x8a   : > { %2304 = vmatpush3.bf16.msra.mxu1 %v2585_v32  ;;  %2385 = vmatprep.subr.bf16.mxu0 %v2586_v43  ;;  %v499_v32 = vld [vmem:[%s3065_s24 + $0x60] sm:$0xff]  ;;  %s2847_s24 = smov [#allocation11]  }
  0x8b   : > { %1110 = vperm.xlu0 %2552, %v1060_v14   ;;  %v527_v34 = vunpack.c.l.s8.bf16 %v499_v32  ;;  %v531_v39 = vunpack.c.h.s8.bf16 %v499_v32  ;;  %s2720_s22 = sshll.u32 %s2847_s24, 4  ;;  %s2721_s22 = int_to_ptr.vmem [resolvable:$false] %s2720_s22 }
  0x8c   : > { %840 = vmatmul.mubr.bf16.vlgmr.msra.gmra.mxu0 %v503_v41  ;;  %1115 = vperm.xlu1 %2553, %v1061_v21   ;;  %v2594_v41 = vld [vmem:[%s3047_s16] sm:$0xff]   ;;  %s2722_s25 = scalar_lea.vmem %s2721_s22, 2048  ;;  %p2723_p8 = scmp.lt.s32.totalorder %s3256_s8, %s2721_s22 }
  0x8d   : > { %937 = vmatmul.mubr.bf16.vlgmr.msra.gmra.mxu1 %v505_v42  ;;  %847 = vmatprep.mubr.bf16.mxu0 %v508_v37  ;;  %v532_v37 = vunpack.c.h.s8.bf16 %v500_v22  ;;  %v2595_v42 = vld [vmem:[%s3047_s16 + $0x8] sm:$0xff]   ;;  %p2724_p10 = scmp.lt.s32.totalorder %s2722_s25, %s2716_s23 }
  0x8e   : > { %2386 = vmatpush3.bf16.msra.mxu0 %v2586_v43  ;;  %944 = vmatprep.mubr.bf16.mxu1 %v510_v40  ;;  %v533_v40 = vunpack.c.h.s8.bf16 %v501_v33  ;;  %v2596_v43 = vld [vmem:[%s3047_s16 + $0x10] sm:$0xff]  }
  0x8f   : > { %2387 = vmatprep.subr.bf16.mxu0 %v2587_v44  ;;  %1120 = vperm.xlu0 %2552, %v1062_v20   ;;  %p2725_p0 = por %p2724_p10, %p2723_p8 }
  0x90   : > { %1125 = vperm.xlu1 %2553, %v1063_v27  }
  0x91   : > { %p2726_p5 = pnand %p2725_p0, %p2719_p3 }
  0x92   : > { %2388 = vmatpush3.bf16.msra.mxu0 %v2587_v44  ;;  %v2597_v44 = vld [vmem:[%s3047_s16 + $0x18] sm:$0xff]  }
  0x93   : > { %2389 = vmatprep.subr.bf16.mxu0 %v2588_v47  ;;  %1130 = vperm.xlu0 %2552, %v1064_v24  }
  0x94   : > { %848 = vmatmul.mubr.bf16.gmra.mxu0 %v507_v48  ;;  %1135 = vperm.xlu1 %2553, %v1065_v31   ;;  %v2602_v48 = vld [vmem:[#allocation9 + $0x38] sm:$0xff]  }
  0x95   : > { %945 = vmatmul.mubr.bf16.gmra.mxu1 %v509_v49  ;;  %855 = vmatprep.mubr.bf16.mxu0 %v512_v50  ;;  %v2601_v49 = vld [vmem:[%s3047_s16 + $0x38] sm:$0xff]   ;;  %v2603_v50 = vld [vmem:[#allocation9 + $0x30] sm:$0xff]  }
  0x96   : > { %952 = vmatprep.mubr.bf16.mxu1 %v514_v51  ;;  %2390 = vmatpush3.bf16.msra.mxu0 %v2588_v47  ;;  %v2600_v47 = vld [vmem:[%s3047_s16 + $0x30] sm:$0xff]   ;;  %v2604_v51 = vld [vmem:[#allocation9 + $0x28] sm:$0xff]  }
  0x97   : > { %2391 = vmatprep.subr.bf16.mxu0 %v2589_v52  ;;  %1140 = vperm.xlu0 %2552, %v1066_v30  }
  0x98   : > { %1145 = vperm.xlu1 %2553, %v1067_v36   ;;  %2417 = vmatprep.subr.bf16.mxu1 %v2602_v48 }
  0x99   : > { %2418 = vmatpush3.bf16.msra.mxu1 %v2602_v48 }
  0x9a   : > { %2392 = vmatpush3.bf16.msra.mxu0 %v2589_v52  ;;  %2419 = vmatprep.subr.bf16.mxu1 %v2603_v50  ;;  %v2605_v52 = vld [vmem:[#allocation9 + $0x20] sm:$0xff]  }
  0x9b   : > { %2393 = vmatprep.subr.bf16.mxu0 %v2590_v55 }
  0x9c   : > { %856 = vmatmul.mubr.bf16.gmra.mxu0 %v511_v56  ;;  %v2609_v56 = vld [vmem:[#allocation9] sm:$0xff]  }
  0x9d   : > { %953 = vmatmul.mubr.bf16.gmra.mxu1 %v513_v57  ;;  %863 = vmatprep.mubr.bf16.mxu0 %v516_v58 }
  0x9e   : > { %960 = vmatprep.mubr.bf16.mxu1 %v518_v59  ;;  %2394 = vmatpush3.bf16.msra.mxu0 %v2590_v55  ;;  %v2608_v55 = vld [vmem:[#allocation9 + $0x8] sm:$0xff]  }
  0x9f   : > { %2395 = vmatprep.subr.bf16.mxu0 %v2591_v61  ;;  %2420 = vmatpush3.bf16.msra.mxu1 %v2603_v50 }
  0xa0   : > { %2421 = vmatprep.subr.bf16.mxu1 %v2604_v51 }
  0xa2   : > { %2396 = vmatpush3.bf16.msra.mxu0 %v2591_v61 }
  0xa3   : > { %2397 = vmatprep.subr.bf16.mxu0 %v2592_v2  ;;  %2422 = vmatpush3.bf16.msra.mxu1 %v2604_v51 }
  0xa4   : > { %864 = vmatmul.mubr.bf16.gmra.mxu0 %v515_v4  ;;  %2423 = vmatprep.subr.bf16.mxu1 %v2605_v52 }
  0xa5   : > { %961 = vmatmul.mubr.bf16.gmra.mxu1 %v517_v5  ;;  %871 = vmatprep.mubr.bf16.mxu0 %v520_v7 }
  0xa6   : > { %968 = vmatprep.mubr.bf16.mxu1 %v522_v8  ;;  %2398 = vmatpush3.bf16.msra.mxu0 %v2592_v2 }
  0xa7   : > { %2399 = vmatprep.subr.bf16.mxu0 %v2593_v9  ;;  %2424 = vmatpush3.bf16.msra.mxu1 %v2605_v52 }
  0xa8   : > { %2425 = vmatprep.subr.bf16.mxu1 %v2606_v53 }
  0xaa   : > { %2400 = vmatpush3.bf16.msra.mxu0 %v2593_v9 }
  0xab   : > { %2426 = vmatpush3.bf16.msra.mxu1 %v2606_v53 }
  0xac   : > { %872 = vmatmul.mubr.bf16.gmra.mxu0 %v519_v15  ;;  %2427 = vmatprep.subr.bf16.mxu1 %v2607_v54 }
  0xad   : > { %969 = vmatmul.mubr.bf16.gmra.mxu1 %v521_v16  ;;  %879 = vmatprep.mubr.bf16.mxu0 %v524_v18 }
  0xae   : > { %976 = vmatprep.mubr.bf16.mxu1 %v526_v19 }
  0xaf   : > { %2428 = vmatpush3.bf16.msra.mxu1 %v2607_v54 }
  0xb0   : > { %2429 = vmatprep.subr.bf16.mxu1 %v2608_v55 }
  0xb3   : > { %2430 = vmatpush3.bf16.msra.mxu1 %v2608_v55 }
  0xb4   : > { %880 = vmatmul.mubr.bf16.gmra.mxu0 %v523_v25  ;;  %2431 = vmatprep.subr.bf16.mxu1 %v2609_v56 }
  0xb5   : > { %977 = vmatmul.mubr.bf16.gmra.mxu1 %v525_v26  ;;  %887 = vmatprep.mubr.bf16.mxu0 %v528_v28 }
  0xb6   : > { %984 = vmatprep.mubr.bf16.mxu1 %v530_v29 }
  0xb7   : > { %2432 = vmatpush3.bf16.msra.mxu1 %v2609_v56 }
  0xbc   : > { %888 = vmatmul.mubr.bf16.gmra.mxu0 %v527_v34 }
  0xbd   : > { %985 = vmatmul.mubr.bf16.gmra.mxu1 %v529_v35  ;;  %895 = vmatprep.mubr.bf16.mxu0 %v532_v37 }
  0xbe   : > { %992 = vmatprep.mubr.bf16.mxu1 %v534_v38 }
  0xc4   : > { %896 = vmatmul.mubr.bf16.gmra.mxu0 %v531_v39 }
  0xc5   : > { %993 = vmatmul.mubr.bf16.gmra.mxu1 %v533_v40  ;;  %2401 = vmatprep.mubr.bf16.mxu0 %v2594_v41 }
  0xcc   : > { %2402 = vmatmul.mubr.bf16.vlgmr.msra.gmra.mxu0 %v2595_v42 }
  0xcd   : > { %2405 = vmatprep.mubr.bf16.mxu0 %v2596_v43 }
  0xd4   : > { %2406 = vmatmul.mubr.bf16.gmra.mxu0 %v2597_v44 }
  0xd5   : > { %2409 = vmatprep.mubr.bf16.mxu0 %v2598_v45 }
  0xdc   : > { %2410 = vmatmul.mubr.bf16.gmra.mxu0 %v2599_v46 }
  0xdd   : > { %2413 = vmatprep.mubr.bf16.mxu0 %v2600_v47 }
  0xe4   : > { %2414 = vmatmul.mubr.bf16.gmra.mxu0 %v2601_v49 }
  0xf6   : > { %v1071_v45 = vpop.permute.xlu0 %1070 }
  0xf7   : > { %v1081_v53 = vpop.permute.xlu1 %1080 }
 0x14c   : > { %v2241_v57 = vpop.f32.mrf.mxu0 }
 0x14d   : > { %v2305_v58 = vpop.f32.mrf.mxu1 }
 0x14e   : > { %v2242_v59 = vpop.f32.mrf.mxu0 }
 0x14f   : > { %v2306_v60 = vpop.f32.mrf.mxu1  ;;  %v2243_v51 = vadd.f32 %v2242_v59, %v2241_v57  ;;  %v1086_v59 = vpop.permute.xlu1 %1085 }
 0x150   : > { %v3113_v61 = vpop.f32.mrf.mxu0  ;;  %v2307_v52 = vadd.f32 %v2306_v60, %v2305_v58 }
 0x151   : > { %v3115_v62 = vpop.f32.mrf.mxu1 }
 0x152   : > { %v3117_v63 = vpop.f32.mrf.mxu0 }
 0x153   : > { %v3119_v0 = vpop.f32.mrf.mxu1 }
 0x154   : > { %v2247_v1 = vpop.f32.mrf.mxu0 }
 0x155   : > { %v2311_v2 = vpop.f32.mrf.mxu1 }
 0x156   : > { %v2248_v3 = vpop.f32.mrf.mxu0 }
 0x157   : > { %v2312_v4 = vpop.f32.mrf.mxu1  ;;  %v2249_v47 = vadd.f32 %v2248_v3, %v2247_v1  ;;  %v2246_v1 = vadd.f32 %v3117_v63, %v3113_v61 }
 0x158   : > { %v2250_v5 = vpop.f32.mrf.mxu0  ;;  %v2313_v48 = vadd.f32 %v2312_v4, %v2311_v2  ;;  %v2310_v2 = vadd.f32 %v3119_v0, %v3115_v62  ;;  %v3188_v62 = vld [vmem:[%s3355_s4] ss:$0 sm:$0xff] }
 0x159   : > { %v2314_v6 = vpop.f32.mrf.mxu1 }
 0x15a   : > { %v2251_v7 = vpop.f32.mrf.mxu0  ;;  %v947_v55 = vadd.f32 %v2313_v48, %v2249_v47 }
 0x15b   : > { %v2315_v8 = vpop.f32.mrf.mxu1  ;;  %v2252_v56 = vadd.f32 %v2251_v7, %v2250_v5 }
 0x15c   : > { %v2253_v9 = vpop.f32.mrf.mxu0  ;;  %v1150_v58 = vmul.f32 %v1081_v53, %v947_v55 }
 0x15d   : > { %v2317_v10 = vpop.f32.mrf.mxu1 }
 0x15e   : > { %v2254_v11 = vpop.f32.mrf.mxu0 }
 0x15f   : > { %v2318_v12 = vpop.f32.mrf.mxu1 }
 0x160   : > { %v3121_v13 = vpop.f32.mrf.mxu0  ;;  %v2319_v7 = vadd.f32 %v2318_v12, %v2317_v10 }
 0x161   : > { %v3123_v14 = vpop.f32.mrf.mxu1 }
 0x162   : > { %v3125_v15 = vpop.f32.mrf.mxu0 }
 0x163   : > { %v3127_v16 = vpop.f32.mrf.mxu1  ;;  %v2258_v10 = vadd.f32 %v3125_v15, %v3121_v13 }
 0x164   : > { %v2259_v17 = vpop.f32.mrf.mxu0 }
 0x165   : > { %v2323_v18 = vpop.f32.mrf.mxu1 }
 0x166   : > { %v2260_v19 = vpop.f32.mrf.mxu0 }
 0x167   : > { %v2324_v20 = vpop.f32.mrf.mxu1  ;;  %v2261_v3 = vadd.f32 %v2260_v19, %v2259_v17  ;;  %v1096_v17 = vpop.permute.xlu1 %1095 }
 0x168   : > { %v2262_v21 = vpop.f32.mrf.mxu0  ;;  %v2325_v4 = vadd.f32 %v2324_v20, %v2323_v18 }
 0x169   : > { %v2326_v22 = vpop.f32.mrf.mxu1 }
 0x16a   : > { %v2263_v23 = vpop.f32.mrf.mxu0  ;;  %v963_v18 = vadd.f32 %v2325_v4, %v2261_v3 }
 0x16b   : > { %v2327_v24 = vpop.f32.mrf.mxu1  ;;  %v2264_v61 = vadd.f32 %v2263_v23, %v2262_v21 }
 0x16c   : > { %v3129_v25 = vpop.f32.mrf.mxu0  ;;  %v2328_v63 = vadd.f32 %v2327_v24, %v2326_v22 }
 0x16d   : > { %v3131_v26 = vpop.f32.mrf.mxu1 }
 0x16e   : > { %v3133_v27 = vpop.f32.mrf.mxu0 }
 0x16f   : > { %v3135_v28 = vpop.f32.mrf.mxu1 }
 0x170   : > { %v3137_v29 = vpop.f32.mrf.mxu0 }
 0x171   : > { %v3139_v30 = vpop.f32.mrf.mxu1 }
 0x172   : > { %v3141_v31 = vpop.f32.mrf.mxu0 }
 0x173   : > { %v3143_v32 = vpop.f32.mrf.mxu1 }
 0x174   : > { %v3145_v33 = vpop.f32.mrf.mxu0 }
 0x175   : > { %v3147_v34 = vpop.f32.mrf.mxu1 }
 0x176   : > { %v2272_v35 = vpop.f32.mrf.mxu0 }
 0x177   : > { %v2336_v36 = vpop.f32.mrf.mxu1 }
 0x178   : > { %v3149_v37 = vpop.f32.mrf.mxu0  ;;  %v2337_v53 = vadd.f32 %v2336_v36, %v3147_v34 }
 0x179   : > { %v3151_v38 = vpop.f32.mrf.mxu1 }
 0x17a   : > { %v3153_v39 = vpop.f32.mrf.mxu0 }
 0x17b   : > { %v3155_v40 = vpop.f32.mrf.mxu1 }
 0x17c   : > { %v3157_v41 = vpop.f32.mrf.mxu0 }
 0x17d   : > { %3391 = vst [vmem:[#allocation22_spill] sm:$0xff] %v3157_v41  ;;  %v3161_v43 = vpop.f32.mrf.mxu1 }
 0x17e   : > { %v3159_v42 = vpop.f32.mrf.mxu0  ;;  %3393 = vst [vmem:[#allocation24_spill] sm:$0xff] %v3161_v43 }
 0x17f   : > { %3392 = vst [vmem:[#allocation23_spill] sm:$0xff] %v3159_v42  ;;  %v3167_v49 = vpop.f32.mrf.mxu1  ;;  %v2316_v42 = vadd.f32 %v2315_v8, %v2314_v6  ;;  %v2255_v6 = vadd.f32 %v2254_v11, %v2253_v9  ;;  %v2322_v11 = vadd.f32 %v3127_v16, %v3123_v14 }
 0x180   : > { %v3163_v44 = vpop.f32.mrf.mxu0 }
 0x181   : > { %3394 = vst [vmem:[#allocation25_spill] sm:$0xff] %v3163_v44  ;;  %v3173_v43 = vpop.f32.mrf.mxu1  ;;  %v1076_v44 = vpop.permute.xlu0 %1075  ;;  %v950_v60 = vadd.f32 %v2316_v42, %v2252_v56  ;;  %v955_v9 = vadd.f32 %v2319_v7, %v2255_v6  ;;  %v2276_v7 = vadd.f32 %v3153_v39, %v3149_v37 }
 0x182   : > { %v3165_v46 = vpop.f32.mrf.mxu0 }
 0x183   : > { %3395 = vst [vmem:[#allocation26_spill] sm:$0xff] %v3165_v46  ;;  %v939_v46 = vadd.f32 %v2307_v52, %v2243_v51  ;;  %v3183_v5 = vpop.f32.mrf.mxu1  ;;  %v942_v51 = vadd.f32 %v2310_v2, %v2246_v1  ;;  %v1151_v42 = vmul.f32 %v1086_v59, %v950_v60  ;;  %v1106_v1 = vpop.permute.xlu1 %1105  ;;  %v2331_v59 = vadd.f32 %v3135_v28, %v3131_v26 }
 0x184   : > { %v3169_v50 = vpop.f32.mrf.mxu0 }
 0x185   : > { %v1091_v8 = vpop.permute.xlu0 %1090  ;;  %v1148_v48 = vmul.f32 %v1071_v45, %v939_v46  ;;  %v2347_v19 = vpop.f32.mrf.mxu1  ;;  %v1149_v22 = vmul.f32 %v1076_v44, %v942_v51  ;;  %v966_v45 = vadd.f32 %v2328_v63, %v2264_v61  ;;  %v2273_v46 = vadd.f32 %v2272_v35, %v3145_v33 }
 0x186   : > { %v3171_v54 = vpop.f32.mrf.mxu0  ;;  %v1152_v16 = vmul.f32 %v1091_v8, %v955_v9  ;;  %v2267_v44 = vadd.f32 %v3133_v27, %v3129_v25  ;;  %v2340_v8 = vadd.f32 %v3155_v40, %v3151_v38  ;;  %v2270_v61 = vadd.f32 %v3141_v31, %v3137_v29 }
 0x187   : > { %v2348_v2 = vpop.f32.mrf.mxu1  ;;  %v1155_v4 = vmul.f32 %v1106_v1, %v966_v45  ;;  %v979_v6 = vadd.f32 %v2337_v53, %v2273_v46  ;;  %v1116_v27 = vpop.permute.xlu1 %1115  ;;  %v2334_v63 = vadd.f32 %v3143_v32, %v3139_v30  ;;  %v3398_v45 = vld [vmem:[#allocation24_spill] sm:$0xff] }
 0x188   : > { %v3175_v41 = vpop.f32.mrf.mxu0  ;;  %v2349_v29 = vadd.f32 %v2348_v2, %v2347_v19 }
 0x189   : > { %v1101_v12 = vpop.permute.xlu0 %1100 }
 0x18a   : > { %v3181_v57 = vpop.f32.mrf.mxu0  ;;  %v1154_v56 = vmul.f32 %v1101_v12, %v963_v18  ;;  %v982_v18 = vadd.f32 %v2340_v8, %v2276_v7 }
 0x18b   : > { %v1126_v30 = vpop.permute.xlu1 %1125 }
 0x18c   : > { %v2403_v47 = vpop.f32.mrf.mxu0  ;;  %v1159_v1 = vmul.f32 %v1126_v30, %v982_v18 }
 0x18d   : > { %v1391_v52 = vadd.f32 %v2403_v47, %v1150_v58  ;;  %v958_v58 = vadd.f32 %v2322_v11, %v2258_v10  ;;  %v1111_v33 = vpop.permute.xlu0 %1110  ;;  %v2350_v47 = vpop.f32.mrf.mxu1 }
 0x18e   : > { %v1326_v0 = vpop.f32.mrf.mxu0 }
 0x18f   : > { %v1389_v20 = vadd.f32 %v1326_v0, %v1148_v48  ;;  %v1414_v23 = vadd.f32 %v3188_v62, %v1391_v52  ;;  %v971_v52 = vadd.f32 %v2331_v59, %v2267_v44  ;;  %v1153_v37 = vmul.f32 %v1096_v17, %v958_v58  ;;  %v2351_v32 = vpop.f32.mrf.mxu1 }
 0x190   : > { %v2404_v21 = vpop.f32.mrf.mxu0 }
 0x191   : > { %v1392_v24 = vadd.f32 %v2404_v21, %v1151_v42  ;;  %v1412_v13 = vadd.f32 %v3188_v62, %v1389_v20  ;;  %v1430_v34 = vmax.f32 %v1414_v23, 0.0  ;;  %v1121_v0 = vpop.permute.xlu0 %1120  ;;  %v2285_v20 = vadd.f32 %v3171_v54, %v3169_v50  ;;  %v3397_v23 = vld [vmem:[#allocation23_spill] sm:$0xff] }
 0x192   : > { %v1329_v55 = vpop.f32.mrf.mxu0  ;;  %v1158_v9 = vmul.f32 %v1121_v0, %v979_v6  ;;  %v1156_v12 = vmul.f32 %v1111_v33, %v971_v52  ;;  %v974_v21 = vadd.f32 %v2334_v63, %v2270_v61  ;;  %v2343_v50 = vadd.f32 %v3167_v49, %v3398_v45 }
 0x193   : > { %v1415_v15 = vadd.f32 %v3188_v62, %v1392_v24  ;;  %v1390_v14 = vadd.f32 %v1329_v55, %v1149_v22  ;;  %v1428_v26 = vmax.f32 %v1412_v13, 0.0  ;;  %v3396_v22 = vld [vmem:[#allocation22_spill] sm:$0xff]  ;;  %v995_v2 = vadd.f32 %v2349_v29, %v2285_v20 }
 0x194   : > { %v2407_v35 = vpop.f32.mrf.mxu0  ;;  %v2279_v24 = vadd.f32 %v3397_v23, %v3396_v22  ;;  %v2288_v13 = vadd.f32 %v3181_v57, %v3175_v41  ;;  %v1157_v6 = vmul.f32 %v1116_v27, %v974_v21 }
 0x195   : > { %v1431_v36 = vmax.f32 %v1415_v15, 0.0  ;;  %v1413_v60 = vadd.f32 %v3188_v62, %v1390_v14  ;;  %v1395_v3 = vadd.f32 %v2407_v35, %v1154_v56  ;;  %v1131_v54 = vpop.permute.xlu0 %1130  ;;  %v2352_v15 = vadd.f32 %v2351_v32, %v2350_v47  ;;  %v3399_v35 = vld [vmem:[#allocation25_spill] sm:$0xff] }
 0x196   : > { %v1342_v25 = vpop.f32.mrf.mxu0  ;;  %v987_v33 = vadd.f32 %v2343_v50, %v2279_v24 }
 0x197   : > { %v1445_v28 = vpack.c.bf16 %v1431_v36, %v1430_v34  ;;  %v1429_v48 = vmax.f32 %v1413_v60, 0.0  ;;  %v1393_v51 = vadd.f32 %v1342_v25, %v1152_v16  ;;  %v1418_v38 = vadd.f32 %v3188_v62, %v1395_v3  ;;  %v1136_v16 = vpop.permute.xlu1 %1135  ;;  %v3400_v34 = vld [vmem:[#allocation26_spill] sm:$0xff] }
 0x198   : > { %v2408_v42 = vpop.f32.mrf.mxu0  ;;  %v2282_v36 = vadd.f32 %v3400_v34, %v3399_v35  ;;  %v2346_v60 = vadd.f32 %v3183_v5, %v3173_v43  ;;  %v998_v8 = vadd.f32 %v2352_v15, %v2288_v13  ;;  %v1160_v43 = vmul.f32 %v1131_v54, %v987_v33 }
 0x199   : > { %2211 = vst [vmem:[%s3213_s3 + $0x8] sm:$0xff] %v1445_v28   ;;  %v1396_v39 = vadd.f32 %v2408_v42, %v1155_v4  ;;  %v1444_v40 = vpack.c.bf16 %v1429_v48, %v1428_v26  ;;  %v1416_v17 = vadd.f32 %v3188_v62, %v1393_v51  ;;  %v1434_v46 = vmax.f32 %v1418_v38, 0.0  ;;  %v1141_v3 = vpop.permute.xlu0 %1140 }
 0x19a   : > { %v1345_v31 = vpop.f32.mrf.mxu0  ;;  %v1162_v47 = vmul.f32 %v1141_v3, %v995_v2  ;;  %v990_v5 = vadd.f32 %v2346_v60, %v2282_v36 }
 0x19b   : > { %v1419_v10 = vadd.f32 %v3188_v62, %v1396_v39  ;;  %v1394_v11 = vadd.f32 %v1345_v31, %v1153_v37  ;;  %2135 = vst [vmem:[%s3213_s3] sm:$0xff] %v1444_v40   ;;  %2433 = vmatprep.mubr.bf16.mxu1 %v1444_v40  ;;  %v1432_v58 = vmax.f32 %v1416_v17, 0.0  ;;  %v1146_v26 = vpop.permute.xlu1 %1145 }
 0x19c   : > { %v2411_v19 = vpop.f32.mrf.mxu0  ;;  %2434 = vmatmul.mubr.bf16.vlgmr.msra.gmra.mxu1 %v1445_v28  ;;  %v1163_v42 = vmul.f32 %v1146_v26, %v998_v8  ;;  %v1161_v29 = vmul.f32 %v1136_v16, %v990_v5 }
 0x19d   : > { %v1435_v53 = vmax.f32 %v1419_v10, 0.0  ;;  %v1417_v55 = vadd.f32 %v3188_v62, %v1394_v11  ;;  %v1399_v56 = vadd.f32 %v2411_v19, %v1158_v9 }
 0x19e   : > { %v1358_v14 = vpop.f32.mrf.mxu0 }
 0x19f   : > { %v1433_v44 = vmax.f32 %v1417_v55, 0.0  ;;  %v1397_v49 = vadd.f32 %v1358_v14, %v1156_v12  ;;  %v1447_v59 = vpack.c.bf16 %v1435_v53, %v1434_v46  ;;  %v1422_v41 = vadd.f32 %v3188_v62, %v1399_v56 }
 0x1a0   : > { %v2412_v4 = vpop.f32.mrf.mxu0 }
 0x1a1   : > { %v1400_v57 = vadd.f32 %v2412_v4, %v1159_v1  ;;  %v1446_v7 = vpack.c.bf16 %v1433_v44, %v1432_v58  ;;  %2213 = vst [vmem:[%s3213_s3 + $0x18] sm:$0xff] %v1447_v59   ;;  %v1420_v28 = vadd.f32 %v3188_v62, %v1397_v49  ;;  %v1438_v27 = vmax.f32 %v1422_v41, 0.0 }
 0x1a2   : > { %v1361_v25 = vpop.f32.mrf.mxu0 }
 0x1a3   : > { %v1423_v48 = vadd.f32 %v3188_v62, %v1400_v57  ;;  %v1398_v51 = vadd.f32 %v1361_v25, %v1157_v6  ;;  %2212 = vst [vmem:[%s3213_s3 + $0x10] sm:$0xff] %v1446_v7   ;;  %2437 = vmatprep.mubr.bf16.mxu1 %v1446_v7  ;;  %v1436_v38 = vmax.f32 %v1420_v28, 0.0 }
 0x1a4   : > { %v2415_v52 = vpop.f32.mrf.mxu0  ;;  %2438 = vmatmul.mubr.bf16.gmra.mxu1 %v1447_v59 }
 0x1a5   : > { %v1439_v61 = vmax.f32 %v1423_v48, 0.0  ;;  %v1421_v63 = vadd.f32 %v3188_v62, %v1398_v51  ;;  %v1403_v0 = vadd.f32 %v2415_v52, %v1162_v47 }
 0x1a6   : > { %v1374_v37 = vpop.f32.mrf.mxu0 }
 0x1a7   : > { %v1437_v39 = vmax.f32 %v1421_v63, 0.0  ;;  %v1401_v40 = vadd.f32 %v1374_v37, %v1160_v43  ;;  %v1449_v18 = vpack.c.bf16 %v1439_v61, %v1438_v27  ;;  %v1426_v31 = vadd.f32 %v3188_v62, %v1403_v0 }
 0x1a8   : > { %v2416_v20 = vpop.f32.mrf.mxu0 }
 0x1a9   : > { %v1404_v9 = vadd.f32 %v2416_v20, %v1163_v42  ;;  %v1448_v30 = vpack.c.bf16 %v1437_v39, %v1436_v38  ;;  %2215 = vst [vmem:[%s3213_s3 + $0x28] sm:$0xff] %v1449_v18   ;;  %v1424_v17 = vadd.f32 %v3188_v62, %v1401_v40  ;;  %v1442_v12 = vmax.f32 %v1426_v31, 0.0 }
 0x1aa   : > { %v1377_v32 = vpop.f32.mrf.mxu0 }
 0x1ab   : > { %v1427_v10 = vadd.f32 %v3188_v62, %v1404_v9  ;;  %v1402_v11 = vadd.f32 %v1377_v32, %v1161_v29  ;;  %2214 = vst [vmem:[%s3213_s3 + $0x20] sm:$0xff] %v1448_v30   ;;  %2441 = vmatprep.mubr.bf16.mxu1 %v1448_v30  ;;  %v1440_v23 = vmax.f32 %v1424_v17, 0.0 }
 0x1ac   : > { %2442 = vmatmul.mubr.bf16.gmra.mxu1 %v1449_v18 }
 0x1ad   : > { %v1443_v21 = vmax.f32 %v1427_v10, 0.0  ;;  %v1425_v22 = vadd.f32 %v3188_v62, %v1402_v11 }
 0x1af   : > { %v1441_v24 = vmax.f32 %v1425_v22, 0.0  ;;  %v1451_v45 = vpack.c.bf16 %v1443_v21, %v1442_v12 }
 0x1b1   : > { %v1450_v50 = vpack.c.bf16 %v1441_v24, %v1440_v23  ;;  %2217 = vst [vmem:[%s3213_s3 + $0x38] sm:$0xff] %v1451_v45  }
 0x1b3   : > { %2216 = vst [vmem:[%s3213_s3 + $0x30] sm:$0xff] %v1450_v50   ;;  %2445 = vmatprep.mubr.bf16.mxu1 %v1450_v50 }
 0x1b4   : > { %2446 = vmatmul.mubr.bf16.gmra.mxu1 %v1451_v45 }
 0x1b5   : > { %2729 = shalt.err (!%p2726_p5)
}
 0x1b6   : > { %s2730_s12 = scalar_lea.hbm %s3254_s14, 1024  ;;  %s2734_s13 = scalar_lea.hbm %s3358_s7, 4096 }
 0x1b7   : > { %p2731_p12 = scmp.ne.s32.totalorder %s3254_s14, %s2730_s12  ;;  %p2735_p1 = scmp.lt.s32.totalorder %s3254_s14, %s3358_s7 }
 0x1b8   : > { %p2736_p6 = scmp.lt.s32.totalorder %s2734_s13, %s2730_s12 }
 0x1b9   : > { %p2732_p2 = pnand %p2731_p12, %p3401_p13 }
 0x1ba   : > { %p2737_p9 = por %p2736_p6, %p2735_p1 }
 0x1bb   : > { %p2733_p7 = pneg %p2732_p2 }
 0x1bd   : > { %p2738_p11 = pnand %p2737_p9, %p2733_p7 }
 0x1bf   : > { %2741 = shalt.err (!%p2738_p11)
}
 0x1c0   : > { %s2848_s16 = smov 64   ;;  %s2849_s11 = smov 4  }
 0x1c1   : > { %2463 = dma.vmem_to_hbm [thread:$0]  (%p3401_p13), %s3256_s8, 1024, %s3254_s14, %s1766_s17, %s2848_s16, %s2848_s16, %s2849_s11  }
 0x1c2   : > { %s3285_s23 = scalar_lea.vmem [#allocation12], %s3044_s21  ;;  %s3402_s17 = sld [smem:[#allocation30_spill]] }
 0x1c3   : > { %s1800_s21 = sshll.u32 %s3285_s23, 4  ;;  %s1771_s22 = scalar_lea.sflag [#allocation13], %s3041_s27  ;;  %s3294_s21 = int_to_ptr.vmem [resolvable:$true] %s1800_s21 }
 0x1c4   : > { %s2742_s25 = scalar_lea.vmem %s3294_s21, 1024  ;;  %s2850_s12 = smov [#allocation12]  }
 0x1c5   : > { %p2743_p4 = scmp.ne.s32.totalorder %s3294_s21, %s2742_s25  ;;  %s2746_s18 = sshll.u32 %s2850_s12, 4  ;;  %s2747_s18 = int_to_ptr.vmem [resolvable:$false] %s2746_s18 }
 0x1c6   : > { %s2748_s20 = scalar_lea.vmem %s2747_s18, 2048  ;;  %p2749_p10 = scmp.lt.s32.totalorder %s3294_s21, %s2747_s18 }
 0x1c7   : > { %p2744_p3 = pnand %p2743_p4, %p3401_p13  ;;  %p2750_p0 = scmp.lt.s32.totalorder %s2748_s20, %s2742_s25 }
 0x1c8   : > { %s3302_s24 = scalar_lea.hbm %s3402_s17, %s2129_s5 }
 0x1c9   : > { %p2745_p8 = pneg %p2744_p3  ;;  %p2751_p5 = por %p2750_p0, %p2749_p10 }
 0x1cb   : > { %p2752_p12 = pnand %p2751_p5, %p2745_p8 }
 0x25c   : > { %v2435_v62 = vpop.f32.mrf.mxu1 }
 0x25e   : > { %v1622_v54 = vpop.f32.mrf.mxu1 }
 0x260   : > { %v2436_v19 = vpop.f32.mrf.mxu1 }
 0x261   : > { %v2179_v46 = vpack.c.bf16 %v2436_v19, %v2435_v62 }
 0x262   : > { %v1625_v53 = vpop.f32.mrf.mxu1 }
 0x263   : > { %2218 = vst [vmem:[%s3285_s23 + $0x8] sm:$0xff] %v2179_v46   ;;  %v2174_v55 = vpack.c.bf16 %v1625_v53, %v1622_v54 }
 0x264   : > { %v2439_v56 = vpop.f32.mrf.mxu1 }
 0x265   : > { %2175 = vst [vmem:[%s3285_s23] sm:$0xff] %v2174_v55  }
 0x266   : > { %v1638_v1 = vpop.f32.mrf.mxu1 }
 0x268   : > { %v2440_v2 = vpop.f32.mrf.mxu1 }
 0x269   : > { %v2189_v13 = vpack.c.bf16 %v2440_v2, %v2439_v56 }
 0x26a   : > { %v1641_v15 = vpop.f32.mrf.mxu1 }
 0x26b   : > { %2220 = vst [vmem:[%s3285_s23 + $0x18] sm:$0xff] %v2189_v13   ;;  %v2184_v14 = vpack.c.bf16 %v1641_v15, %v1638_v1 }
 0x26c   : > { %v2443_v16 = vpop.f32.mrf.mxu1 }
 0x26d   : > { %2219 = vst [vmem:[%s3285_s23 + $0x10] sm:$0xff] %v2184_v14  }
 0x26e   : > { %v1654_v58 = vpop.f32.mrf.mxu1 }
 0x270   : > { %v2444_v44 = vpop.f32.mrf.mxu1 }
 0x271   : > { %v2199_v49 = vpack.c.bf16 %v2444_v44, %v2443_v16 }
 0x272   : > { %v1657_v59 = vpop.f32.mrf.mxu1 }
 0x273   : > { %2222 = vst [vmem:[%s3285_s23 + $0x28] sm:$0xff] %v2199_v49   ;;  %v2194_v33 = vpack.c.bf16 %v1657_v59, %v1654_v58 }
 0x274   : > { %v2447_v35 = vpop.f32.mrf.mxu1 }
 0x275   : > { %2221 = vst [vmem:[%s3285_s23 + $0x20] sm:$0xff] %v2194_v33  }
 0x276   : > { %v1670_v34 = vpop.f32.mrf.mxu1 }
 0x278   : > { %v2448_v36 = vpop.f32.mrf.mxu1 }
 0x279   : > { %v2209_v60 = vpack.c.bf16 %v2448_v36, %v2447_v35 }
 0x27a   : > { %v1673_v3 = vpop.f32.mrf.mxu1 }
 0x27b   : > { %2224 = vst [vmem:[%s3285_s23 + $0x38] sm:$0xff] %v2209_v60   ;;  %v2204_v4 = vpack.c.bf16 %v1673_v3, %v1670_v34 }
 0x27d   : > { %2223 = vst [vmem:[%s3285_s23 + $0x30] sm:$0xff] %v2204_v4  }
 0x27e   : > { %2755 = shalt.err (!%p2752_p12)
}
 0x27f   : > { %s2756_s30 = scalar_lea.hbm %s3302_s24, 1024  ;;  %s2760_s13 = scalar_lea.hbm %s3402_s17, 4096 }
 0x280   : > { %p2757_p2 = scmp.ne.s32.totalorder %s3302_s24, %s2756_s30  ;;  %p2761_p6 = scmp.lt.s32.totalorder %s3302_s24, %s3402_s17 }
 0x281   : > { %p2762_p9 = scmp.lt.s32.totalorder %s2760_s13, %s2756_s30 }
 0x282   : > { %p2758_p7 = pnand %p2757_p2, %p3401_p13 }
 0x283   : > { %p2763_p11 = por %p2762_p9, %p2761_p6 }
 0x284   : > { %p2759_p1 = pneg %p2758_p7 }
 0x286   : > { %p2764_p4 = pnand %p2763_p11, %p2759_p1 }
 0x288   : > { %2767 = shalt.err (!%p2764_p4)
}
 0x289   : > { %2464 = dma.vmem_to_hbm [thread:$0]  (%p3401_p13), %s3294_s21, 1024, %s3302_s24, %s1771_s22, %s2848_s16, %s2848_s16, %s2849_s11  }
 0x28a PF: > { %s3403_s23 = sld [smem:[#allocation20_spill]]  ;;  %p2495_p3 = scmp.ge.s32.totalorder %s2838_s10, 2 }
 0x28b   : > { %s3404_s8 = sld [smem:[#allocation21_spill]] }
 0x290   : > { %s1815_s14 = sand.u32 1, %s3403_s23  }
 0x291   : > { %p3405_p8 = scmp.ne.s32.totalorder %s3404_s8, 0  ;;  %s1816_s25 = scalar_lea.sflag [#allocation5], %s1815_s14 }
 0x293   : > { %p2482_p10 = pnand %p2495_p3, %p3405_p8 }
 0x295   : > { %p2483_p0 = pneg %p2482_p10 }
 0x297   : > { %2809 = dma.done.wait (%p2483_p0), %s1816_s25, 1024  }
 0x298   : > { %2811 = vsyncadd (%p2483_p0), %s1816_s25, 4294966272  ;;  %s1825_s12 = scalar_lea.sflag [#allocation13], %s1815_s14 }
 0x299   : > { %2813 = dma.done.wait (%p2483_p0), %s1825_s12, 1024  }
 0x29a   : > { %2815 = vsyncadd (%p2483_p0), %s1825_s12, 4294966272  ;;  %s30_s10 = sadd.s32 1, %s2838_s10   ;;  %s3406_s27 = smov %s2822_s28 }
 0x29b   : > { %p27_p5 = scmp.ge.s32.totalorder %s30_s10, 6   ;;  %s3407_s28 = smov %s2826_s29 }
 0x29c   : > { %s3408_s29 = smov %s3024_s26  ;;  %s3409_s30 = smov %s2834_s9 }
 0x29d   : > { %s3410_s9 = smov %s3412_s19  ;;  %29 = sbr.rel (!%p27_p5) target bundleno = 15 (0xf), region = 138 }
 0x2a2   :  { %1830 = vsyncpa [#allocation4], 1 }
 0x2a3   :  { %1832 = vsyncpa [#allocation4 + $0x1], 1 }
 0x2a4   :  { %1833 = vsyncpa [#allocation7], 1 }
 0x2a5   :  { %1835 = vsyncpa [#allocation7 + $0x1], 1 }
 0x2a6   :  { %1836 = vsyncpa [#allocation10], 1 }
 0x2a7   :  { %1837 = vsyncpa [#allocation5], 1 }
 0x2a8   :  { %1839 = vsyncpa [#allocation5 + $0x1], 1 }
 0x2a9   :  { %1840 = vsyncpa [#allocation13], 1 }
 0x2aa   :  { %1842 = vsyncpa [#allocation13 + $0x1], 1 }

// kernel: tpu_custom_call.1
= control target key start
LH: loop header
LB: loop body
LE: loop exit
PB: predicated region body
PF: predicated region fallthrough
CT: control target
= control target key end

     0   :  { %s3351_s0 = inlined_call_operand.vmem [shape: s8[512,512], index: 0, kind: input, shape index: {}]   ;;  %s3352_s1 = inlined_call_operand.hbm [shape: bf16[512,128], index: 1, kind: input, shape index: {}]   ;;  %s3353_s2 = inlined_call_operand.hbm [shape: bf16[512,128], index: 2, kind: input, shape index: {}]   ;;  %s3354_s3 = inlined_call_operand.hbm [shape: bf16[128,128], index: 3, kind: input, shape index: {}]   ;;  %s3355_s4 = inlined_call_operand.vmem [shape: f32[1,128], index: 4, kind: input, shape index: {}]   ;;  %s3356_s5 = inlined_call_operand.hbm [shape: bf16[128,128], index: 5, kind: input, shape index: {}]   ;;  %s3357_s6 = inlined_call_operand.vmem [shape: f32[512,1], index: 6, kind: input, shape index: {}]   ;;  %s3358_s7 = inlined_call_operand.hbm [shape: bf16[512,128], index: 7, kind: output, shape index: {0}]   ;;  %s3359_s8 = inlined_call_operand.hbm [shape: bf16[512,128], index: 8, kind: output, shape index: {1}]  }
   0x1   :  { %3367 = sst [smem:[#allocation27_spill]] %s3352_s1 }
   0x2   :  { %3368 = sst [smem:[#allocation28_spill]] %s3354_s3 }
   0x3   :  { %3369 = sst [smem:[#allocation29_spill]] %s3356_s5 }
   0x4   :  { %3370 = sst [smem:[#allocation30_spill]] %s3359_s8 }
   0x5   :  { %14 = vsyncpa [#allocation4], 0 }
   0x6   :  { %15 = vsyncpa [#allocation7], 0 }
   0x7   :  { %17 = vsyncpa [#allocation7 + $0x1], 0 }
   0x8   :  { %18 = vsyncpa [#allocation10], 0 }
   0x9   :  { %19 = vsyncpa [#allocation5], 0 }
   0xa   :  { %21 = vsyncpa [#allocation5 + $0x1], 0 }
   0xb   :  { %22 = vsyncpa [#allocation13], 0 }
   0xc   :  { %24 = vsyncpa [#allocation13 + $0x1], 0  ;;  %s2896_s27 = smov 0   ;;  %s2898_s28 = smov 0  }
   0xd   :  { %s2900_s29 = smov 0   ;;  %s2902_s30 = smov 0  }
   0xe   :  { %s2904_s9 = smov 0   ;;  %s2906_s10 = smov 0  }
   0xf LB: > { %3371 = sst [smem:[#allocation20_spill]] %s2818_s27  ;;  %s2927_s11 = sadd.s32 4294967295, %s2838_s10   ;;  %s2838_s10 = sphi %s2906_s10, %s30_s10   ;;  %s2834_s9 = sphi %s2904_s9, %s3410_s9   ;;  %s2830_s30 = sphi %s2902_s30, %s3409_s30   ;;  %s2826_s29 = sphi %s2900_s29, %s3408_s29   ;;  %s2822_s28 = sphi %s2898_s28, %s3407_s28   ;;  %s2818_s27 = sphi %s2896_s27, %s3406_s27  }
  0x10   : > { %s1977_s12 = sadd.s32 4294967294, %s2838_s10   ;;  %p110_p0 = scmp.ne.s32.totalorder %s2826_s29, %s2822_s28 }
  0x11   : > { %p111_p1 = scmp.eq.s32.totalorder %s2838_s10, 0  ;;  %p116_p2 = scmp.ne.s32.totalorder %s2822_s28, %s2818_s27 }
  0x12   : > { %p3360_p3 = scmp.eq.s32.totalorder %s2927_s11, 0  ;;  %p229_p5 = scmp.eq.s32.totalorder %s2927_s11, 3 }
  0x13   : > { %p2936_p4 = por %p111_p1, %p110_p0  ;;  %p235_p7 = scmp.eq.s32.totalorder %s1977_s12, 3 }
  0x14   : > { %p2943_p6 = por %p3360_p3, %p116_p2  ;;  %p2947_p8 = por %p229_p5, %p110_p0 }
  0x15   : > { %p1978_p9 = scmp.ge.s32.totalorder %s2838_s10, 1  ;;  %p2952_p10 = por %p235_p7, %p116_p2 }
  0x16   : > { %s3374_s15 = scalar_select %p2947_p8, 1, 0 }
  0x17   : > { %s3375_s16 = scalar_select %p2952_p10, 1, 0 }
  0x18   : > { %p268_p11 = scmp.lt.s32.totalorder %s2838_s10, 5  ;;  %s2840_s18 = smov [#allocation8]  }
  0x19   : > { %3376 = sst [smem:[#allocation21_spill]] %s3375_s16  ;;  %s296_s19 = sshll.u32 %s2840_s18, 4  ;;  %s297_s19 = int_to_ptr.vmem [resolvable:$true] %s296_s19 }
  0x1a   : > { %p2957_p12 = pnand %p1978_p9, %p268_p11  ;;  %p2491_p0 = scmp.lt.s32.totalorder %s2838_s10, 4 }
  0x1b   : > { %s2621_s22 = scalar_lea.vmem %s297_s19, 1024  ;;  %p2629_p10 = scmp.lt.s32.totalorder %s297_s19, %s297_s19 }
  0x1c   : > { %p2467_p13 = pneg %p2957_p12  ;;  %p2972_p2 = pnand %p2491_p0, %p2936_p4 }
  0x1d   : > { %p2622_p7 = scmp.ne.s32.totalorder %s297_s19, %s2621_s22 }
  0x1e   : > { %p2966_p1 = pnand %p2467_p13, %p3360_p3  ;;  %p2630_p13 = scmp.lt.s32.totalorder %s2621_s22, %s2621_s22 }
  0x20   : > { %p2612_p5 = pneg %p2966_p1  ;;  %p2631_p3 = por %p2630_p13, %p2629_p10 }
  0x22   : > { %p2624_p9 = pnand %p2622_p7, %p2612_p5 }
  0x24   : > { %p2625_p11 = pneg %p2624_p9 }
  0x26   : > { %p2632_p8 = pnand %p2631_p3, %p2625_p11 }
  0x28   : > { %2635 = shalt.err (!%p2632_p8)
}
  0x29   : > { %s3365_s23 = smov 64   ;;  %s3366_s24 = smov 4  }
  0x2a   : > { %s3380_s3 = sld [smem:[#allocation28_spill]]  ;;  %s2843_s12 = smov [#allocation3]  }
  0x2b   : > { %s283_s13 = sshll.u32 %s2843_s12, 4  ;;  %s284_s13 = int_to_ptr.vmem [resolvable:$true] %s283_s13 }
  0x2c   : > { %s2647_s18 = scalar_lea.vmem %s284_s13, 4096  ;;  %p2655_p10 = scmp.lt.s32.totalorder %s284_s13, %s284_s13 }
  0x2d   : > { %p2648_p4 = scmp.ne.s32.totalorder %s284_s13, %s2647_s18  ;;  %p2656_p0 = scmp.lt.s32.totalorder %s2647_s18, %s2647_s18 }
  0x2f   : > { %p2650_p3 = pnand %p2648_p4, %p2612_p5  ;;  %p2657_p7 = por %p2656_p0, %p2655_p10 }
  0x30   : > { %2473 = dma.hbm_to_vmem [thread:$0]  (!%p2966_p1), %s3380_s3, 1024, %s297_s19, [#allocation7], %s3365_s23, %s3365_s23, %s3366_s24  }
  0x31   : > { %p2651_p8 = pneg %p2650_p3 }
  0x33   : > { %p2658_p9 = pnand %p2657_p7, %p2651_p8 }
  0x35   : > { %2661 = shalt.err (!%p2658_p9)
}
  0x36   : > { %s3381_s1 = sld [smem:[#allocation27_spill]]  ;;  %s2844_s25 = smov [#allocation9]  }
  0x37   : > { %s312_s26 = sshll.u32 %s2844_s25, 4  ;;  %s313_s26 = int_to_ptr.vmem [resolvable:$true] %s312_s26 }
  0x38   : > { %s2673_s12 = scalar_lea.vmem %s313_s26, 1024  ;;  %p2681_p3 = scmp.lt.s32.totalorder %s313_s26, %s313_s26 }
  0x39   : > { %p2674_p11 = scmp.ne.s32.totalorder %s313_s26, %s2673_s12  ;;  %p2682_p8 = scmp.lt.s32.totalorder %s2673_s12, %s2673_s12 }
  0x3b   : > { %p2676_p13 = pnand %p2674_p11, %p2612_p5  ;;  %p2683_p10 = por %p2682_p8, %p2681_p3 }
  0x3c   : > { %2470 = dma.hbm_to_vmem [thread:$0]  (!%p2966_p1), %s3381_s1, 4096, %s284_s13, [#allocation4], %s3365_s23, %s3365_s23, %s3366_s24  }
  0x3d   : > { %p2677_p4 = pneg %p2676_p13 }
  0x3f   : > { %p2684_p0 = pnand %p2683_p10, %p2677_p4 }
  0x41   : > { %2687 = shalt.err (!%p2684_p0)
}
  0x42   : > { %s3382_s5 = sld [smem:[#allocation29_spill]]  ;;  %s42_s19 = sadd.s32 1, %s2834_s9 }
  0x43   : > { %p44_p5 = scmp.ge.s32.totalorder %s42_s19, 4  ;;  %s103_s22 = sadd.s32 1, %s2826_s29 }
  0x44   : > { %s341_s25 = sand.u32 1, %s2838_s10   ;;  %s343_s20 = sand.u32 1, %s2826_s29  }
  0x45   : > { %s3412_s19 = smov (%p44_p5, %s42_s19), 0  ;;  %s1983_s12 = sshll.u32 %s343_s20, 6 }
  0x46   : > { %s2095_s1 = sshll.u32 %s2834_s9, 10  ;;  %s100_s13 = ssub.s32 %s2834_s9, %s3412_s19 }
  0x47   : > { %p101_p7 = scmp.eq.s32.totalorder %s100_s13, 0  ;;  %s351_s16 = scalar_lea.hbm %s3353_s2, %s2095_s1 }
  0x48   : > { %2476 = dma.hbm_to_vmem [thread:$0]  (!%p2966_p1), %s3382_s5, 1024, %s313_s26, [#allocation10], %s3365_s23, %s3365_s23, %s3366_s24  }
  0x49   : > { %s345_s27 = scalar_lea.vmem [#allocation6], %s1983_s12  ;;  %s342_s23 = scalar_lea.sflag [#allocation7], %s341_s25 }
  0x4a   : > { %s352_s8 = sshll.u32 %s345_s27, 4  ;;  %p2690_p1 = pneg %p2972_p2  ;;  %s353_s8 = int_to_ptr.vmem [resolvable:$true] %s352_s8 }
  0x4b   : > { %s3024_s26 = scalar_select %p101_p7, %s2826_s29, %s103_s22  }
  0x4c   : > { %s2701_s24 = scalar_lea.vmem %s353_s8, 1024  ;;  %s2845_s20 = smov [#allocation6]  }
  0x4d   : > { %p2702_p9 = scmp.ne.s32.totalorder %s353_s8, %s2701_s24  ;;  %s2706_s5 = sshll.u32 %s2845_s20, 4  ;;  %s2707_s5 = int_to_ptr.vmem [resolvable:$false] %s2706_s5 }
  0x4e   : > { %s2708_s13 = scalar_lea.vmem %s2707_s5, 2048  ;;  %p2709_p4 = scmp.lt.s32.totalorder %s353_s8, %s2707_s5 }
  0x4f   : > { %p2704_p11 = pnand %p2702_p9, %p2690_p1  ;;  %p2710_p3 = scmp.lt.s32.totalorder %s2708_s13, %s2701_s24 }
  0x51   : > { %p2705_p13 = pneg %p2704_p11  ;;  %p2711_p8 = por %p2710_p3, %p2709_p4 }
  0x53   : > { %p2712_p10 = pnand %p2711_p8, %p2705_p13 }
  0x55   : > { %2715 = shalt.err (!%p2712_p10)
}
  0x56   : > { %s3383_s1 = smov 4   ;;  %s3384_s3 = smov 64  }
  0x57   : > { %2480 = dma.hbm_to_vmem [thread:$0]  (!%p2972_p2), %s351_s16, 1024, %s353_s8, %s342_s23, %s3384_s3, %s3384_s3, %s3383_s1  }
  0x58   : > { %373 = sbr.rel (%p2957_p12) target bundleno = 650 (0x28a), region = 48 }
  0x5d   : > { %p3385_p0 = scmp.eq.s32.totalorder %s2927_s11, 0 }
  0x5f   : > { %2793 = dma.done.wait (%p3385_p0), [#allocation4], 4096   ;;  %p3386_p5 = pmov %p3385_p0 }
  0x60   : > { %s379_s5 = sand.u32 1, %s2927_s11   ;;  %s3041_s27 = sand.u32 1, %s2822_s28  }
  0x61   : > { %2795 = vsyncadd (%p3386_p5), [#allocation4], 4294963200  ;;  %s3044_s21 = sshll.u32 %s3041_s27, 6  ;;  %s380_s8 = scalar_lea.sflag [#allocation7], %s379_s5 }
  0x62   : > { %s3047_s16 = scalar_lea.vmem [#allocation6], %s3044_s21 }
  0x63   : > { %2797 = dma.done.wait (%p2943_p6), %s380_s8, 1024  }
  0x64   : > { %2799 = vsyncadd (%p2943_p6), %s380_s8, 4294966272  ;;  %p3387_p12 = pmov %p3385_p0 }
  0x65   : > { %p3388_p2 = pmov %p3385_p0 }
  0x66   : > { %2801 = dma.done.wait (%p3387_p12), [#allocation7], 1024  }
  0x67   : > { %2803 = vsyncadd (%p3388_p2), [#allocation7], 4294966272  ;;  %p3389_p7 = pmov %p3385_p0 }
  0x68   : > { %p3390_p1 = pmov %p3385_p0 }
  0x69   : > { %2805 = dma.done.wait (%p3389_p7), [#allocation10], 1024  }
  0x6a   : > { %2807 = vsyncadd (%p3390_p1), [#allocation10], 4294966272  ;;  %v2846_v0 = vmov 0   ;;  %v2554_v1 = vld [vmem:[#allocation3 + $0x78] sm:$0xff]   ;;  %v2558_v5 = vld [vmem:[#allocation3 + $0x70] sm:$0xff]   ;;  %s1993_s11 = sshll.u32 %s2830_s30, 2 }
  0x6b   : > { %2552 = vset.pattern.permute.xlu0 %v2846_v0  ;;  %2553 = vset.pattern.permute.xlu1 %v2846_v0  ;;  %v2555_v2 = vld [vmem:[#allocation3 + $0xf8] sm:$0xff]   ;;  %v2559_v6 = vld [vmem:[#allocation3 + $0xf0] sm:$0xff]   ;;  %v2562_v9 = vld [vmem:[#allocation3 + $0x68] sm:$0xff]   ;;  %p446_p6 = scmp.lt.s32.totalorder %s1993_s11, 15  ;;  %s1996_s22 = sshll.u32 %s2830_s30, 4 }
  0x6c   : > { %2225 = vmatprep.subr.bf16.mxu0 %v2554_v1  ;;  %v2556_v3 = vld [vmem:[#allocation3 + $0x38] sm:$0xff]   ;;  %2289 = vmatprep.subr.bf16.mxu1 %v2555_v2  ;;  %v2560_v7 = vld [vmem:[#allocation3 + $0x30] sm:$0xff]   ;;  %v2563_v10 = vld [vmem:[#allocation3 + $0xe8] sm:$0xff]   ;;  %p459_p9 = scmp.lt.s32.totalorder %s1996_s22, 63  ;;  %s3213_s3 = scalar_lea.vmem [#allocation11], %s3044_s21 }
  0x6d   : > { %v2557_v4 = vld [vmem:[#allocation3 + $0xb8] sm:$0xff]   ;;  %2226 = vmatpush3.bf16.msra.mxu0 %v2556_v3  ;;  %v2561_v8 = vld [vmem:[#allocation3 + $0xb0] sm:$0xff]   ;;  %v2564_v11 = vld [vmem:[#allocation3 + $0x28] sm:$0xff]   ;;  %s3414_s11 = smov (!%p446_p6, %s1993_s11), 15  ;;  %s2129_s5 = sshll.u32 %s2830_s30, 10 }
  0x6e   : > { %2290 = vmatpush3.bf16.msra.mxu1 %v2557_v4  ;;  %2227 = vmatprep.subr.bf16.mxu0 %v2558_v5  ;;  %v2565_v12 = vld [vmem:[#allocation3 + $0xa8] sm:$0xff]   ;;  %v2566_v13 = vld [vmem:[#allocation3 + $0x60] sm:$0xff]   ;;  %v2570_v17 = vld [vmem:[#allocation3 + $0x58] sm:$0xff]   ;;  %s2096_s14 = sshll.u32 %s3414_s11, 5  ;;  %s3416_s22 = smov (!%p459_p9, %s1996_s22), 63 }
  0x6f   : > { %2291 = vmatprep.subr.bf16.mxu1 %v2559_v6  ;;  %v2567_v14 = vld [vmem:[#allocation3 + $0xe0] sm:$0xff]   ;;  %v2571_v18 = vld [vmem:[#allocation3 + $0xd8] sm:$0xff]   ;;  %v2574_v21 = vld [vmem:[#allocation3 + $0x50] sm:$0xff]   ;;  %s3065_s24 = scalar_lea.vmem %s3351_s0, %s2096_s14  ;;  %s1997_s25 = sshll.u32 %s3416_s22, 3 }
  0x70   : > { %v2568_v15 = vld [vmem:[#allocation3 + $0x20] sm:$0xff]   ;;  %v2572_v19 = vld [vmem:[#allocation3 + $0x18] sm:$0xff]   ;;  %v2575_v22 = vld [vmem:[#allocation3 + $0xd0] sm:$0xff]   ;;  %s3079_s20 = scalar_lea.vmem %s3357_s6, %s1997_s25  ;;  %s1784_s8 = sshll.u32 %s3213_s3, 4  ;;  %s3256_s8 = int_to_ptr.vmem [resolvable:$true] %s1784_s8 }
  0x71   : > { %2228 = vmatpush3.bf16.msra.mxu0 %v2560_v7  ;;  %v2569_v16 = vld [vmem:[#allocation3 + $0xa0] sm:$0xff]   ;;  %v2573_v20 = vld [vmem:[#allocation3 + $0x98] sm:$0xff]   ;;  %v2576_v23 = vld [vmem:[#allocation3 + $0x10] sm:$0xff]   ;;  %s3254_s14 = scalar_lea.hbm %s3358_s7, %s2129_s5  ;;  %s1766_s17 = scalar_lea.sflag [#allocation5], %s3041_s27 }
  0x72   : > { %2292 = vmatpush3.bf16.msra.mxu1 %v2561_v8  ;;  %2229 = vmatprep.subr.bf16.mxu0 %v2562_v9  ;;  %v2577_v24 = vld [vmem:[#allocation3 + $0x90] sm:$0xff]   ;;  %v2578_v25 = vld [vmem:[#allocation3 + $0x48] sm:$0xff]   ;;  %v2582_v29 = vld [vmem:[#allocation3 + $0x40] sm:$0xff]   ;;  %s2716_s23 = scalar_lea.vmem %s3256_s8, 1024  ;;  %p3401_p13 = scmp.ne.s32.totalorder %s3374_s15, 0 }
  0x73   : > { %2293 = vmatprep.subr.bf16.mxu1 %v2563_v10  ;;  %v2579_v26 = vld [vmem:[#allocation3 + $0xc8] sm:$0xff]   ;;  %v2583_v30 = vld [vmem:[#allocation3 + $0xc0] sm:$0xff]   ;;  %v490_v34 = vld [vmem:[%s3065_s24 + $0x18] sm:$0xff]  ;;  %p2717_p11 = scmp.ne.s32.totalorder %s3256_s8, %s2716_s23 }
  0x74   : > { %v2580_v27 = vld [vmem:[#allocation3 + $0x8] sm:$0xff]   ;;  %v2584_v31 = vld [vmem:[#allocation3] sm:$0xff]   ;;  %v506_v38 = vunpack.c.l.s8.bf16 %v490_v34  ;;  %v489_v39 = vld [vmem:[%s3065_s24 + $0x10] sm:$0xff]  ;;  %v510_v40 = vunpack.c.h.s8.bf16 %v490_v34 }
  0x75   : > { %2230 = vmatpush3.bf16.msra.mxu0 %v2564_v11  ;;  %v2581_v28 = vld [vmem:[#allocation3 + $0x88] sm:$0xff]   ;;  %v2585_v32 = vld [vmem:[#allocation3 + $0x80] sm:$0xff]   ;;  %v505_v42 = vunpack.c.l.s8.bf16 %v489_v39  ;;  %v2586_v43 = vld [vmem:[#allocation8 + $0x38] sm:$0xff]   ;;  %v509_v49 = vunpack.c.h.s8.bf16 %v489_v39  ;;  %p2718_p4 = pnand %p2717_p11, %p3401_p13 }
  0x76   : > { %2294 = vmatpush3.bf16.msra.mxu1 %v2565_v12  ;;  %2231 = vmatprep.subr.bf16.mxu0 %v2566_v13  ;;  %v488_v33 = vld [vmem:[%s3065_s24 + $0x8] sm:$0xff]  ;;  %v487_v35 = vld [vmem:[%s3065_s24] sm:$0xff]  ;;  %v2587_v44 = vld [vmem:[#allocation8 + $0x30] sm:$0xff]  }
  0x77   : > { %2295 = vmatprep.subr.bf16.mxu1 %v2567_v14  ;;  %v504_v36 = vunpack.c.l.s8.bf16 %v488_v33  ;;  %v508_v37 = vunpack.c.h.s8.bf16 %v488_v33  ;;  %v503_v41 = vunpack.c.l.s8.bf16 %v487_v35  ;;  %936 = vmatprep.mubr.bf16.mxu1 %v506_v38  ;;  %v492_v45 = vld [vmem:[%s3065_s24 + $0x28] sm:$0xff]  ;;  %v494_v46 = vld [vmem:[%s3065_s24 + $0x38] sm:$0xff]  ;;  %v507_v48 = vunpack.c.h.s8.bf16 %v487_v35  ;;  %v2589_v52 = vld [vmem:[#allocation8 + $0x20] sm:$0xff]   ;;  %p2719_p3 = pneg %p2718_p4 }
  0x78   : > { %v2588_v47 = vld [vmem:[#allocation8 + $0x28] sm:$0xff]   ;;  %v512_v50 = vunpack.c.l.s8.bf16 %v492_v45  ;;  %v514_v51 = vunpack.c.l.s8.bf16 %v494_v46  ;;  %v491_v53 = vld [vmem:[%s3065_s24 + $0x20] sm:$0xff]  ;;  %v493_v54 = vld [vmem:[%s3065_s24 + $0x30] sm:$0xff]  ;;  %v516_v58 = vunpack.c.h.s8.bf16 %v492_v45  ;;  %v518_v59 = vunpack.c.h.s8.bf16 %v494_v46 }
  0x79   : > { %2232 = vmatpush3.bf16.msra.mxu0 %v2568_v15  ;;  %839 = vmatprep.mubr.bf16.mxu0 %v504_v36  ;;  %v2590_v55 = vld [vmem:[#allocation8 + $0x18] sm:$0xff]   ;;  %v511_v56 = vunpack.c.l.s8.bf16 %v491_v53  ;;  %v513_v57 = vunpack.c.l.s8.bf16 %v493_v54  ;;  %v1052_v60 = vld [vmem:[%s3079_s20] sm:$0xff]  ;;  %v2591_v61 = vld [vmem:[#allocation8 + $0x10] sm:$0xff]   ;;  %v515_v4 = vunpack.c.h.s8.bf16 %v491_v53  ;;  %v517_v5 = vunpack.c.h.s8.bf16 %v493_v54 }
  0x7a   : > { %2296 = vmatpush3.bf16.msra.mxu1 %v2569_v16  ;;  %2233 = vmatprep.subr.bf16.mxu0 %v2570_v17  ;;  %v1053_v62 = vld [vmem:[%s3079_s20 + $0x8] sm:$0xff]  ;;  %v1054_v63 = vld [vmem:[%s3079_s20 + $0x10] sm:$0xff]  ;;  %v498_v1 = vld [vmem:[%s3065_s24 + $0x58] sm:$0xff] }
  0x7b   : > { %2297 = vmatprep.subr.bf16.mxu1 %v2571_v18  ;;  %1070 = vperm.xlu0 %2552, %v1052_v60   ;;  %v496_v0 = vld [vmem:[%s3065_s24 + $0x48] sm:$0xff]  ;;  %v1056_v3 = vld [vmem:[%s3079_s20 + $0x20] sm:$0xff]  ;;  %v1055_v6 = vld [vmem:[%s3079_s20 + $0x18] sm:$0xff]  ;;  %v522_v8 = vunpack.c.l.s8.bf16 %v498_v1 }
  0x7c   : > { %v2592_v2 = vld [vmem:[#allocation8 + $0x8] sm:$0xff]   ;;  %1080 = vperm.xlu1 %2553, %v1054_v63   ;;  %v520_v7 = vunpack.c.l.s8.bf16 %v496_v0  ;;  %v2593_v9 = vld [vmem:[#allocation8] sm:$0xff]   ;;  %v1058_v11 = vld [vmem:[%s3079_s20 + $0x30] sm:$0xff]  ;;  %v524_v18 = vunpack.c.h.s8.bf16 %v496_v0 }
  0x7d   : > { %2234 = vmatpush3.bf16.msra.mxu0 %v2572_v19  ;;  %v1057_v10 = vld [vmem:[%s3079_s20 + $0x28] sm:$0xff]  ;;  %v495_v12 = vld [vmem:[%s3065_s24 + $0x40] sm:$0xff]  ;;  %v497_v13 = vld [vmem:[%s3065_s24 + $0x50] sm:$0xff]  ;;  %v526_v19 = vunpack.c.h.s8.bf16 %v498_v1 }
  0x7e   : > { %2298 = vmatpush3.bf16.msra.mxu1 %v2573_v20  ;;  %2235 = vmatprep.subr.bf16.mxu0 %v2574_v21  ;;  %v1060_v14 = vld [vmem:[%s3079_s20 + $0x40] sm:$0xff]  ;;  %v519_v15 = vunpack.c.l.s8.bf16 %v495_v12  ;;  %v521_v16 = vunpack.c.l.s8.bf16 %v497_v13  ;;  %v1059_v17 = vld [vmem:[%s3079_s20 + $0x38] sm:$0xff]  ;;  %v1062_v20 = vld [vmem:[%s3079_s20 + $0x50] sm:$0xff] }
  0x7f   : > { %2299 = vmatprep.subr.bf16.mxu1 %v2575_v22  ;;  %1075 = vperm.xlu0 %2552, %v1053_v62   ;;  %v1061_v21 = vld [vmem:[%s3079_s20 + $0x48] sm:$0xff]  ;;  %v501_v33 = vld [vmem:[%s3065_s24 + $0x70] sm:$0xff]  ;;  %v1067_v36 = vld [vmem:[%s3079_s20 + $0x78] sm:$0xff] }
  0x80   : > { %1085 = vperm.xlu1 %2553, %v1055_v6   ;;  %v500_v22 = vld [vmem:[%s3065_s24 + $0x68] sm:$0xff]  ;;  %v529_v35 = vunpack.c.l.s8.bf16 %v501_v33  ;;  %v2598_v45 = vld [vmem:[%s3047_s16 + $0x20] sm:$0xff]   ;;  %v2606_v53 = vld [vmem:[#allocation9 + $0x18] sm:$0xff]  }
  0x81   : > { %2236 = vmatpush3.bf16.msra.mxu0 %v2576_v23  ;;  %v502_v23 = vld [vmem:[%s3065_s24 + $0x78] sm:$0xff]  ;;  %v2599_v46 = vld [vmem:[%s3047_s16 + $0x28] sm:$0xff]   ;;  %v2607_v54 = vld [vmem:[#allocation9 + $0x10] sm:$0xff]  }
  0x82   : > { %2300 = vmatpush3.bf16.msra.mxu1 %v2577_v24  ;;  %2237 = vmatprep.subr.bf16.mxu0 %v2578_v25  ;;  %v1064_v24 = vld [vmem:[%s3079_s20 + $0x60] sm:$0xff]  ;;  %v523_v25 = vunpack.c.h.s8.bf16 %v495_v12  ;;  %v534_v38 = vunpack.c.h.s8.bf16 %v502_v23 }
  0x83   : > { %2301 = vmatprep.subr.bf16.mxu1 %v2579_v26  ;;  %1090 = vperm.xlu0 %2552, %v1056_v3   ;;  %v525_v26 = vunpack.c.h.s8.bf16 %v497_v13 }
  0x84   : > { %1095 = vperm.xlu1 %2553, %v1057_v10  }
  0x85   : > { %2238 = vmatpush3.bf16.msra.mxu0 %v2580_v27  ;;  %v1063_v27 = vld [vmem:[%s3079_s20 + $0x58] sm:$0xff] }
  0x86   : > { %2302 = vmatpush3.bf16.msra.mxu1 %v2581_v28  ;;  %2239 = vmatprep.subr.bf16.mxu0 %v2582_v29  ;;  %v528_v28 = vunpack.c.l.s8.bf16 %v500_v22  ;;  %v530_v29 = vunpack.c.l.s8.bf16 %v502_v23 }
  0x87   : > { %2303 = vmatprep.subr.bf16.mxu1 %v2583_v30  ;;  %1100 = vperm.xlu0 %2552, %v1058_v11   ;;  %v1066_v30 = vld [vmem:[%s3079_s20 + $0x70] sm:$0xff] }
  0x88   : > { %1105 = vperm.xlu1 %2553, %v1059_v17  }
  0x89   : > { %2240 = vmatpush3.bf16.msra.mxu0 %v2584_v31  ;;  %v1065_v31 = vld [vmem:[%s3079_s20 + $0x68] sm:$0xff] }
  0x8a   : > { %2304 = vmatpush3.bf16.msra.mxu1 %v2585_v32  ;;  %2385 = vmatprep.subr.bf16.mxu0 %v2586_v43  ;;  %v499_v32 = vld [vmem:[%s3065_s24 + $0x60] sm:$0xff]  ;;  %s2847_s24 = smov [#allocation11]  }
  0x8b   : > { %1110 = vperm.xlu0 %2552, %v1060_v14   ;;  %v527_v34 = vunpack.c.l.s8.bf16 %v499_v32  ;;  %v531_v39 = vunpack.c.h.s8.bf16 %v499_v32  ;;  %s2720_s22 = sshll.u32 %s2847_s24, 4  ;;  %s2721_s22 = int_to_ptr.vmem [resolvable:$false] %s2720_s22 }
  0x8c   : > { %840 = vmatmul.mubr.bf16.vlgmr.msra.gmra.mxu0 %v503_v41  ;;  %1115 = vperm.xlu1 %2553, %v1061_v21   ;;  %v2594_v41 = vld [vmem:[%s3047_s16] sm:$0xff]   ;;  %s2722_s25 = scalar_lea.vmem %s2721_s22, 2048  ;;  %p2723_p8 = scmp.lt.s32.totalorder %s3256_s8, %s2721_s22 }
  0x8d   : > { %937 = vmatmul.mubr.bf16.vlgmr.msra.gmra.mxu1 %v505_v42  ;;  %847 = vmatprep.mubr.bf16.mxu0 %v508_v37  ;;  %v532_v37 = vunpack.c.h.s8.bf16 %v500_v22  ;;  %v2595_v42 = vld [vmem:[%s3047_s16 + $0x8] sm:$0xff]   ;;  %p2724_p10 = scmp.lt.s32.totalorder %s2722_s25, %s2716_s23 }
  0x8e   : > { %2386 = vmatpush3.bf16.msra.mxu0 %v2586_v43  ;;  %944 = vmatprep.mubr.bf16.mxu1 %v510_v40  ;;  %v533_v40 = vunpack.c.h.s8.bf16 %v501_v33  ;;  %v2596_v43 = vld [vmem:[%s3047_s16 + $0x10] sm:$0xff]  }
  0x8f   : > { %2387 = vmatprep.subr.bf16.mxu0 %v2587_v44  ;;  %1120 = vperm.xlu0 %2552, %v1062_v20   ;;  %p2725_p0 = por %p2724_p10, %p2723_p8 }
  0x90   : > { %1125 = vperm.xlu1 %2553, %v1063_v27  }
  0x91   : > { %p2726_p5 = pnand %p2725_p0, %p2719_p3 }
  0x92   : > { %2388 = vmatpush3.bf16.msra.mxu0 %v2587_v44  ;;  %v2597_v44 = vld [vmem:[%s3047_s16 + $0x18] sm:$0xff]  }
  0x93   : > { %2389 = vmatprep.subr.bf16.mxu0 %v2588_v47  ;;  %1130 = vperm.xlu0 %2552, %v1064_v24  }
  0x94   : > { %848 = vmatmul.mubr.bf16.gmra.mxu0 %v507_v48  ;;  %1135 = vperm.xlu1 %2553, %v1065_v31   ;;  %v2602_v48 = vld [vmem:[#allocation9 + $0x38] sm:$0xff]  }
  0x95   : > { %945 = vmatmul.mubr.bf16.gmra.mxu1 %v509_v49  ;;  %855 = vmatprep.mubr.bf16.mxu0 %v512_v50  ;;  %v2601_v49 = vld [vmem:[%s3047_s16 + $0x38] sm:$0xff]   ;;  %v2603_v50 = vld [vmem:[#allocation9 + $0x30] sm:$0xff]  }
  0x96   : > { %952 = vmatprep.mubr.bf16.mxu1 %v514_v51  ;;  %2390 = vmatpush3.bf16.msra.mxu0 %v2588_v47  ;;  %v2600_v47 = vld [vmem:[%s3047_s16 + $0x30] sm:$0xff]   ;;  %v2604_v51 = vld [vmem:[#allocation9 + $0x28] sm:$0xff]  }
  0x97   : > { %2391 = vmatprep.subr.bf16.mxu0 %v2589_v52  ;;  %1140 = vperm.xlu0 %2552, %v1066_v30  }
  0x98   : > { %1145 = vperm.xlu1 %2553, %v1067_v36   ;;  %2417 = vmatprep.subr.bf16.mxu1 %v2602_v48 }
  0x99   : > { %2418 = vmatpush3.bf16.msra.mxu1 %v2602_v48 }
  0x9a   : > { %2392 = vmatpush3.bf16.msra.mxu0 %v2589_v52  ;;  %2419 = vmatprep.subr.bf16.mxu1 %v2603_v50  ;;  %v2605_v52 = vld [vmem:[#allocation9 + $0x20] sm:$0xff]  }
  0x9b   : > { %2393 = vmatprep.subr.bf16.mxu0 %v2590_v55 }
  0x9c   : > { %856 = vmatmul.mubr.bf16.gmra.mxu0 %v511_v56  ;;  %v2609_v56 = vld [vmem:[#allocation9] sm:$0xff]  }
  0x9d   : > { %953 = vmatmul.mubr.bf16.gmra.mxu1 %v513_v57  ;;  %863 = vmatprep.mubr.bf16.mxu0 %v516_v58 }
  0x9e   : > { %960 = vmatprep.mubr.bf16.mxu1 %v518_v59  ;;  %2394 = vmatpush3.bf16.msra.mxu0 %v2590_v55  ;;  %v2608_v55 = vld [vmem:[#allocation9 + $0x8] sm:$0xff]  }
  0x9f   : > { %2395 = vmatprep.subr.bf16.mxu0 %v2591_v61  ;;  %2420 = vmatpush3.bf16.msra.mxu1 %v2603_v50 }
  0xa0   : > { %2421 = vmatprep.subr.bf16.mxu1 %v2604_v51 }
  0xa2   : > { %2396 = vmatpush3.bf16.msra.mxu0 %v2591_v61 }
  0xa3   : > { %2397 = vmatprep.subr.bf16.mxu0 %v2592_v2  ;;  %2422 = vmatpush3.bf16.msra.mxu1 %v2604_v51 }
  0xa4   : > { %864 = vmatmul.mubr.bf16.gmra.mxu0 %v515_v4  ;;  %2423 = vmatprep.subr.bf16.mxu1 %v2605_v52 }
  0xa5   : > { %961 = vmatmul.mubr.bf16.gmra.mxu1 %v517_v5  ;;  %871 = vmatprep.mubr.bf16.mxu0 %v520_v7 }
  0xa6   : > { %968 = vmatprep.mubr.bf16.mxu1 %v522_v8  ;;  %2398 = vmatpush3.bf16.msra.mxu0 %v2592_v2 }
  0xa7   : > { %2399 = vmatprep.subr.bf16.mxu0 %v2593_v9  ;;  %2424 = vmatpush3.bf16.msra.mxu1 %v2605_v52 }
  0xa8   : > { %2425 = vmatprep.subr.bf16.mxu1 %v2606_v53 }
  0xaa   : > { %2400 = vmatpush3.bf16.msra.mxu0 %v2593_v9 }
  0xab   : > { %2426 = vmatpush3.bf16.msra.mxu1 %v2606_v53 }
  0xac   : > { %872 = vmatmul.mubr.bf16.gmra.mxu0 %v519_v15  ;;  %2427 = vmatprep.subr.bf16.mxu1 %v2607_v54 }
  0xad   : > { %969 = vmatmul.mubr.bf16.gmra.mxu1 %v521_v16  ;;  %879 = vmatprep.mubr.bf16.mxu0 %v524_v18 }
  0xae   : > { %976 = vmatprep.mubr.bf16.mxu1 %v526_v19 }
  0xaf   : > { %2428 = vmatpush3.bf16.msra.mxu1 %v2607_v54 }
  0xb0   : > { %2429 = vmatprep.subr.bf16.mxu1 %v2608_v55 }
  0xb3   : > { %2430 = vmatpush3.bf16.msra.mxu1 %v2608_v55 }
  0xb4   : > { %880 = vmatmul.mubr.bf16.gmra.mxu0 %v523_v25  ;;  %2431 = vmatprep.subr.bf16.mxu1 %v2609_v56 }
  0xb5   : > { %977 = vmatmul.mubr.bf16.gmra.mxu1 %v525_v26  ;;  %887 = vmatprep.mubr.bf16.mxu0 %v528_v28 }
  0xb6   : > { %984 = vmatprep.mubr.bf16.mxu1 %v530_v29 }
  0xb7   : > { %2432 = vmatpush3.bf16.msra.mxu1 %v2609_v56 }
  0xbc   : > { %888 = vmatmul.mubr.bf16.gmra.mxu0 %v527_v34 }
  0xbd   : > { %985 = vmatmul.mubr.bf16.gmra.mxu1 %v529_v35  ;;  %895 = vmatprep.mubr.bf16.mxu0 %v532_v37 }
  0xbe   : > { %992 = vmatprep.mubr.bf16.mxu1 %v534_v38 }
  0xc4   : > { %896 = vmatmul.mubr.bf16.gmra.mxu0 %v531_v39 }
  0xc5   : > { %993 = vmatmul.mubr.bf16.gmra.mxu1 %v533_v40  ;;  %2401 = vmatprep.mubr.bf16.mxu0 %v2594_v41 }
  0xcc   : > { %2402 = vmatmul.mubr.bf16.vlgmr.msra.gmra.mxu0 %v2595_v42 }
  0xcd   : > { %2405 = vmatprep.mubr.bf16.mxu0 %v2596_v43 }
  0xd4   : > { %2406 = vmatmul.mubr.bf16.gmra.mxu0 %v2597_v44 }
  0xd5   : > { %2409 = vmatprep.mubr.bf16.mxu0 %v2598_v45 }
  0xdc   : > { %2410 = vmatmul.mubr.bf16.gmra.mxu0 %v2599_v46 }
  0xdd   : > { %2413 = vmatprep.mubr.bf16.mxu0 %v2600_v47 }
  0xe4   : > { %2414 = vmatmul.mubr.bf16.gmra.mxu0 %v2601_v49 }
  0xf6   : > { %v1071_v45 = vpop.permute.xlu0 %1070 }
  0xf7   : > { %v1081_v53 = vpop.permute.xlu1 %1080 }
 0x14c   : > { %v2241_v57 = vpop.f32.mrf.mxu0 }
 0x14d   : > { %v2305_v58 = vpop.f32.mrf.mxu1 }
 0x14e   : > { %v2242_v59 = vpop.f32.mrf.mxu0 }
 0x14f   : > { %v2306_v60 = vpop.f32.mrf.mxu1  ;;  %v2243_v51 = vadd.f32 %v2242_v59, %v2241_v57  ;;  %v1086_v59 = vpop.permute.xlu1 %1085 }
 0x150   : > { %v3113_v61 = vpop.f32.mrf.mxu0  ;;  %v2307_v52 = vadd.f32 %v2306_v60, %v2305_v58 }
 0x151   : > { %v3115_v62 = vpop.f32.mrf.mxu1 }
 0x152   : > { %v3117_v63 = vpop.f32.mrf.mxu0 }
 0x153   : > { %v3119_v0 = vpop.f32.mrf.mxu1 }
 0x154   : > { %v2247_v1 = vpop.f32.mrf.mxu0 }
 0x155   : > { %v2311_v2 = vpop.f32.mrf.mxu1 }
 0x156   : > { %v2248_v3 = vpop.f32.mrf.mxu0 }
 0x157   : > { %v2312_v4 = vpop.f32.mrf.mxu1  ;;  %v2249_v47 = vadd.f32 %v2248_v3, %v2247_v1  ;;  %v2246_v1 = vadd.f32 %v3117_v63, %v3113_v61 }
 0x158   : > { %v2250_v5 = vpop.f32.mrf.mxu0  ;;  %v2313_v48 = vadd.f32 %v2312_v4, %v2311_v2  ;;  %v2310_v2 = vadd.f32 %v3119_v0, %v3115_v62  ;;  %v3188_v62 = vld [vmem:[%s3355_s4] ss:$0 sm:$0xff] }
 0x159   : > { %v2314_v6 = vpop.f32.mrf.mxu1 }
 0x15a   : > { %v2251_v7 = vpop.f32.mrf.mxu0  ;;  %v947_v55 = vadd.f32 %v2313_v48, %v2249_v47 }
 0x15b   : > { %v2315_v8 = vpop.f32.mrf.mxu1  ;;  %v2252_v56 = vadd.f32 %v2251_v7, %v2250_v5 }
 0x15c   : > { %v2253_v9 = vpop.f32.mrf.mxu0  ;;  %v1150_v58 = vmul.f32 %v1081_v53, %v947_v55 }
 0x15d   : > { %v2317_v10 = vpop.f32.mrf.mxu1 }
 0x15e   : > { %v2254_v11 = vpop.f32.mrf.mxu0 }
 0x15f   : > { %v2318_v12 = vpop.f32.mrf.mxu1 }
 0x160   : > { %v3121_v13 = vpop.f32.mrf.mxu0  ;;  %v2319_v7 = vadd.f32 %v2318_v12, %v2317_v10 }
 0x161   : > { %v3123_v14 = vpop.f32.mrf.mxu1 }
 0x162   : > { %v3125_v15 = vpop.f32.mrf.mxu0 }
 0x163   : > { %v3127_v16 = vpop.f32.mrf.mxu1  ;;  %v2258_v10 = vadd.f32 %v3125_v15, %v3121_v13 }
 0x164   : > { %v2259_v17 = vpop.f32.mrf.mxu0 }
 0x165   : > { %v2323_v18 = vpop.f32.mrf.mxu1 }
 0x166   : > { %v2260_v19 = vpop.f32.mrf.mxu0 }
 0x167   : > { %v2324_v20 = vpop.f32.mrf.mxu1  ;;  %v2261_v3 = vadd.f32 %v2260_v19, %v2259_v17  ;;  %v1096_v17 = vpop.permute.xlu1 %1095 }
 0x168   : > { %v2262_v21 = vpop.f32.mrf.mxu0  ;;  %v2325_v4 = vadd.f32 %v2324_v20, %v2323_v18 }
 0x169   : > { %v2326_v22 = vpop.f32.mrf.mxu1 }
 0x16a   : > { %v2263_v23 = vpop.f32.mrf.mxu0  ;;  %v963_v18 = vadd.f32 %v2325_v4, %v2261_v3 }
 0x16b   : > { %v2327_v24 = vpop.f32.mrf.mxu1  ;;  %v2264_v61 = vadd.f32 %v2263_v23, %v2262_v21 }
 0x16c   : > { %v3129_v25 = vpop.f32.mrf.mxu0  ;;  %v2328_v63 = vadd.f32 %v2327_v24, %v2326_v22 }
 0x16d   : > { %v3131_v26 = vpop.f32.mrf.mxu1 }
 0x16e   : > { %v3133_v27 = vpop.f32.mrf.mxu0 }
 0x16f   : > { %v3135_v28 = vpop.f32.mrf.mxu1 }
 0x170   : > { %v3137_v29 = vpop.f32.mrf.mxu0 }
 0x171   : > { %v3139_v30 = vpop.f32.mrf.mxu1 }
 0x172   : > { %v3141_v31 = vpop.f32.mrf.mxu0 }
 0x173   : > { %v3143_v32 = vpop.f32.mrf.mxu1 }
 0x174   : > { %v3145_v33 = vpop.f32.mrf.mxu0 }
 0x175   : > { %v3147_v34 = vpop.f32.mrf.mxu1 }
 0x176   : > { %v2272_v35 = vpop.f32.mrf.mxu0 }
 0x177   : > { %v2336_v36 = vpop.f32.mrf.mxu1 }
 0x178   : > { %v3149_v37 = vpop.f32.mrf.mxu0  ;;  %v2337_v53 = vadd.f32 %v2336_v36, %v3147_v34 }
 0x179   : > { %v3151_v38 = vpop.f32.mrf.mxu1 }
 0x17a   : > { %v3153_v39 = vpop.f32.mrf.mxu0 }
 0x17b   : > { %v3155_v40 = vpop.f32.mrf.mxu1 }
 0x17c   : > { %v3157_v41 = vpop.f32.mrf.mxu0 }
 0x17d   : > { %3391 = vst [vmem:[#allocation22_spill] sm:$0xff] %v3157_v41  ;;  %v3161_v43 = vpop.f32.mrf.mxu1 }
 0x17e   : > { %v3159_v42 = vpop.f32.mrf.mxu0  ;;  %3393 = vst [vmem:[#allocation24_spill] sm:$0xff] %v3161_v43 }
 0x17f   : > { %3392 = vst [vmem:[#allocation23_spill] sm:$0xff] %v3159_v42  ;;  %v3167_v49 = vpop.f32.mrf.mxu1  ;;  %v2316_v42 = vadd.f32 %v2315_v8, %v2314_v6  ;;  %v2255_v6 = vadd.f32 %v2254_v11, %v2253_v9  ;;  %v2322_v11 = vadd.f32 %v3127_v16, %v3123_v14 }
 0x180   : > { %v3163_v44 = vpop.f32.mrf.mxu0 }
 0x181   : > { %3394 = vst [vmem:[#allocation25_spill] sm:$0xff] %v3163_v44  ;;  %v3173_v43 = vpop.f32.mrf.mxu1  ;;  %v1076_v44 = vpop.permute.xlu0 %1075  ;;  %v950_v60 = vadd.f32 %v2316_v42, %v2252_v56  ;;  %v955_v9 = vadd.f32 %v2319_v7, %v2255_v6  ;;  %v2276_v7 = vadd.f32 %v3153_v39, %v3149_v37 }
 0x182   : > { %v3165_v46 = vpop.f32.mrf.mxu0 }
 0x183   : > { %3395 = vst [vmem:[#allocation26_spill] sm:$0xff] %v3165_v46  ;;  %v939_v46 = vadd.f32 %v2307_v52, %v2243_v51  ;;  %v3183_v5 = vpop.f32.mrf.mxu1  ;;  %v942_v51 = vadd.f32 %v2310_v2, %v2246_v1  ;;  %v1151_v42 = vmul.f32 %v1086_v59, %v950_v60  ;;  %v1106_v1 = vpop.permute.xlu1 %1105  ;;  %v2331_v59 = vadd.f32 %v3135_v28, %v3131_v26 }
 0x184   : > { %v3169_v50 = vpop.f32.mrf.mxu0 }
 0x185   : > { %v1091_v8 = vpop.permute.xlu0 %1090  ;;  %v1148_v48 = vmul.f32 %v1071_v45, %v939_v46  ;;  %v2347_v19 = vpop.f32.mrf.mxu1  ;;  %v1149_v22 = vmul.f32 %v1076_v44, %v942_v51  ;;  %v966_v45 = vadd.f32 %v2328_v63, %v2264_v61  ;;  %v2273_v46 = vadd.f32 %v2272_v35, %v3145_v33 }
 0x186   : > { %v3171_v54 = vpop.f32.mrf.mxu0  ;;  %v1152_v16 = vmul.f32 %v1091_v8, %v955_v9  ;;  %v2267_v44 = vadd.f32 %v3133_v27, %v3129_v25  ;;  %v2340_v8 = vadd.f32 %v3155_v40, %v3151_v38  ;;  %v2270_v61 = vadd.f32 %v3141_v31, %v3137_v29 }
 0x187   : > { %v2348_v2 = vpop.f32.mrf.mxu1  ;;  %v1155_v4 = vmul.f32 %v1106_v1, %v966_v45  ;;  %v979_v6 = vadd.f32 %v2337_v53, %v2273_v46  ;;  %v1116_v27 = vpop.permute.xlu1 %1115  ;;  %v2334_v63 = vadd.f32 %v3143_v32, %v3139_v30  ;;  %v3398_v45 = vld [vmem:[#allocation24_spill] sm:$0xff] }
 0x188   : > { %v3175_v41 = vpop.f32.mrf.mxu0  ;;  %v2349_v29 = vadd.f32 %v2348_v2, %v2347_v19 }
 0x189   : > { %v1101_v12 = vpop.permute.xlu0 %1100 }
 0x18a   : > { %v3181_v57 = vpop.f32.mrf.mxu0  ;;  %v1154_v56 = vmul.f32 %v1101_v12, %v963_v18  ;;  %v982_v18 = vadd.f32 %v2340_v8, %v2276_v7 }
 0x18b   : > { %v1126_v30 = vpop.permute.xlu1 %1125 }
 0x18c   : > { %v2403_v47 = vpop.f32.mrf.mxu0  ;;  %v1159_v1 = vmul.f32 %v1126_v30, %v982_v18 }
 0x18d   : > { %v1391_v52 = vadd.f32 %v2403_v47, %v1150_v58  ;;  %v958_v58 = vadd.f32 %v2322_v11, %v2258_v10  ;;  %v1111_v33 = vpop.permute.xlu0 %1110  ;;  %v2350_v47 = vpop.f32.mrf.mxu1 }
 0x18e   : > { %v1326_v0 = vpop.f32.mrf.mxu0 }
 0x18f   : > { %v1389_v20 = vadd.f32 %v1326_v0, %v1148_v48  ;;  %v1414_v23 = vadd.f32 %v3188_v62, %v1391_v52  ;;  %v971_v52 = vadd.f32 %v2331_v59, %v2267_v44  ;;  %v1153_v37 = vmul.f32 %v1096_v17, %v958_v58  ;;  %v2351_v32 = vpop.f32.mrf.mxu1 }
 0x190   : > { %v2404_v21 = vpop.f32.mrf.mxu0 }
 0x191   : > { %v1392_v24 = vadd.f32 %v2404_v21, %v1151_v42  ;;  %v1412_v13 = vadd.f32 %v3188_v62, %v1389_v20  ;;  %v1430_v34 = vmax.f32 %v1414_v23, 0.0  ;;  %v1121_v0 = vpop.permute.xlu0 %1120  ;;  %v2285_v20 = vadd.f32 %v3171_v54, %v3169_v50  ;;  %v3397_v23 = vld [vmem:[#allocation23_spill] sm:$0xff] }
 0x192   : > { %v1329_v55 = vpop.f32.mrf.mxu0  ;;  %v1158_v9 = vmul.f32 %v1121_v0, %v979_v6  ;;  %v1156_v12 = vmul.f32 %v1111_v33, %v971_v52  ;;  %v974_v21 = vadd.f32 %v2334_v63, %v2270_v61  ;;  %v2343_v50 = vadd.f32 %v3167_v49, %v3398_v45 }
 0x193   : > { %v1415_v15 = vadd.f32 %v3188_v62, %v1392_v24  ;;  %v1390_v14 = vadd.f32 %v1329_v55, %v1149_v22  ;;  %v1428_v26 = vmax.f32 %v1412_v13, 0.0  ;;  %v3396_v22 = vld [vmem:[#allocation22_spill] sm:$0xff]  ;;  %v995_v2 = vadd.f32 %v2349_v29, %v2285_v20 }
 0x194   : > { %v2407_v35 = vpop.f32.mrf.mxu0  ;;  %v2279_v24 = vadd.f32 %v3397_v23, %v3396_v22  ;;  %v2288_v13 = vadd.f32 %v3181_v57, %v3175_v41  ;;  %v1157_v6 = vmul.f32 %v1116_v27, %v974_v21 }
 0x195   : > { %v1431_v36 = vmax.f32 %v1415_v15, 0.0  ;;  %v1413_v60 = vadd.f32 %v3188_v62, %v1390_v14  ;;  %v1395_v3 = vadd.f32 %v2407_v35, %v1154_v56  ;;  %v1131_v54 = vpop.permute.xlu0 %1130  ;;  %v2352_v15 = vadd.f32 %v2351_v32, %v2350_v47  ;;  %v3399_v35 = vld [vmem:[#allocation25_spill] sm:$0xff] }
 0x196   : > { %v1342_v25 = vpop.f32.mrf.mxu0  ;;  %v987_v33 = vadd.f32 %v2343_v50, %v2279_v24 }
 0x197   : > { %v1445_v28 = vpack.c.bf16 %v1431_v36, %v1430_v34  ;;  %v1429_v48 = vmax.f32 %v1413_v60, 0.0  ;;  %v1393_v51 = vadd.f32 %v1342_v25, %v1152_v16  ;;  %v1418_v38 = vadd.f32 %v3188_v62, %v1395_v3  ;;  %v1136_v16 = vpop.permute.xlu1 %1135  ;;  %v3400_v34 = vld [vmem:[#allocation26_spill] sm:$0xff] }
 0x198   : > { %v2408_v42 = vpop.f32.mrf.mxu0  ;;  %v2282_v36 = vadd.f32 %v3400_v34, %v3399_v35  ;;  %v2346_v60 = vadd.f32 %v3183_v5, %v3173_v43  ;;  %v998_v8 = vadd.f32 %v2352_v15, %v2288_v13  ;;  %v1160_v43 = vmul.f32 %v1131_v54, %v987_v33 }
 0x199   : > { %2211 = vst [vmem:[%s3213_s3 + $0x8] sm:$0xff] %v1445_v28   ;;  %v1396_v39 = vadd.f32 %v2408_v42, %v1155_v4  ;;  %v1444_v40 = vpack.c.bf16 %v1429_v48, %v1428_v26  ;;  %v1416_v17 = vadd.f32 %v3188_v62, %v1393_v51  ;;  %v1434_v46 = vmax.f32 %v1418_v38, 0.0  ;;  %v1141_v3 = vpop.permute.xlu0 %1140 }
 0x19a   : > { %v1345_v31 = vpop.f32.mrf.mxu0  ;;  %v1162_v47 = vmul.f32 %v1141_v3, %v995_v2  ;;  %v990_v5 = vadd.f32 %v2346_v60, %v2282_v36 }
 0x19b   : > { %v1419_v10 = vadd.f32 %v3188_v62, %v1396_v39  ;;  %v1394_v11 = vadd.f32 %v1345_v31, %v1153_v37  ;;  %2135 = vst [vmem:[%s3213_s3] sm:$0xff] %v1444_v40   ;;  %2433 = vmatprep.mubr.bf16.mxu1 %v1444_v40  ;;  %v1432_v58 = vmax.f32 %v1416_v17, 0.0  ;;  %v1146_v26 = vpop.permute.xlu1 %1145 }
 0x19c   : > { %v2411_v19 = vpop.f32.mrf.mxu0  ;;  %2434 = vmatmul.mubr.bf16.vlgmr.msra.gmra.mxu1 %v1445_v28  ;;  %v1163_v42 = vmul.f32 %v1146_v26, %v998_v8  ;;  %v1161_v29 = vmul.f32 %v1136_v16, %v990_v5 }
 0x19d   : > { %v1435_v53 = vmax.f32 %v1419_v10, 0.0  ;;  %v1417_v55 = vadd.f32 %v3188_v62, %v1394_v11  ;;  %v1399_v56 = vadd.f32 %v2411_v19, %v1158_v9 }
 0x19e   : > { %v1358_v14 = vpop.f32.mrf.mxu0 }
 0x19f   : > { %v1433_v44 = vmax.f32 %v1417_v55, 0.0  ;;  %v1397_v49 = vadd.f32 %v1358_v14, %v1156_v12  ;;  %v1447_v59 = vpack.c.bf16 %v1435_v53, %v1434_v46  ;;  %v1422_v41 = vadd.f32 %v3188_v62, %v1399_v56 }
 0x1a0   : > { %v2412_v4 = vpop.f32.mrf.mxu0 }
 0x1a1   : > { %v1400_v57 = vadd.f32 %v2412_v4, %v1159_v1  ;;  %v1446_v7 = vpack.c.bf16 %v1433_v44, %v1432_v58  ;;  %2213 = vst [vmem:[%s3213_s3 + $0x18] sm:$0xff] %v1447_v59   ;;  %v1420_v28 = vadd.f32 %v3188_v62, %v1397_v49  ;;  %v1438_v27 = vmax.f32 %v1422_v41, 0.0 }
 0x1a2   : > { %v1361_v25 = vpop.f32.mrf.mxu0 }
 0x1a3   : > { %v1423_v48 = vadd.f32 %v3188_v62, %v1400_v57  ;;  %v1398_v51 = vadd.f32 %v1361_v25, %v1157_v6  ;;  %2212 = vst [vmem:[%s3213_s3 + $0x10] sm:$0xff] %v1446_v7   ;;  %2437 = vmatprep.mubr.bf16.mxu1 %v1446_v7  ;;  %v1436_v38 = vmax.f32 %v1420_v28, 0.0 }
 0x1a4   : > { %v2415_v52 = vpop.f32.mrf.mxu0  ;;  %2438 = vmatmul.mubr.bf16.gmra.mxu1 %v1447_v59 }
 0x1a5   : > { %v1439_v61 = vmax.f32 %v1423_v48, 0.0  ;;  %v1421_v63 = vadd.f32 %v3188_v62, %v1398_v51  ;;  %v1403_v0 = vadd.f32 %v2415_v52, %v1162_v47 }
 0x1a6   : > { %v1374_v37 = vpop.f32.mrf.mxu0 }
 0x1a7   : > { %v1437_v39 = vmax.f32 %v1421_v63, 0.0  ;;  %v1401_v40 = vadd.f32 %v1374_v37, %v1160_v43  ;;  %v1449_v18 = vpack.c.bf16 %v1439_v61, %v1438_v27  ;;  %v1426_v31 = vadd.f32 %v3188_v62, %v1403_v0 }
 0x1a8   : > { %v2416_v20 = vpop.f32.mrf.mxu0 }
 0x1a9   : > { %v1404_v9 = vadd.f32 %v2416_v20, %v1163_v42  ;;  %v1448_v30 = vpack.c.bf16 %v1437_v39, %v1436_v38  ;;  %2215 = vst [vmem:[%s3213_s3 + $0x28] sm:$0xff] %v1449_v18   ;;  %v1424_v17 = vadd.f32 %v3188_v62, %v1401_v40  ;;  %v1442_v12 = vmax.f32 %v1426_v31, 0.0 }
 0x1aa   : > { %v1377_v32 = vpop.f32.mrf.mxu0 }
 0x1ab   : > { %v1427_v10 = vadd.f32 %v3188_v62, %v1404_v9  ;;  %v1402_v11 = vadd.f32 %v1377_v32, %v1161_v29  ;;  %2214 = vst [vmem:[%s3213_s3 + $0x20] sm:$0xff] %v1448_v30   ;;  %2441 = vmatprep.mubr.bf16.mxu1 %v1448_v30  ;;  %v1440_v23 = vmax.f32 %v1424_v17, 0.0 }
 0x1ac   : > { %2442 = vmatmul.mubr.bf16.gmra.mxu1 %v1449_v18 }
 0x1ad   : > { %v1443_v21 = vmax.f32 %v1427_v10, 0.0  ;;  %v1425_v22 = vadd.f32 %v3188_v62, %v1402_v11 }
 0x1af   : > { %v1441_v24 = vmax.f32 %v1425_v22, 0.0  ;;  %v1451_v45 = vpack.c.bf16 %v1443_v21, %v1442_v12 }
 0x1b1   : > { %v1450_v50 = vpack.c.bf16 %v1441_v24, %v1440_v23  ;;  %2217 = vst [vmem:[%s3213_s3 + $0x38] sm:$0xff] %v1451_v45  }
 0x1b3   : > { %2216 = vst [vmem:[%s3213_s3 + $0x30] sm:$0xff] %v1450_v50   ;;  %2445 = vmatprep.mubr.bf16.mxu1 %v1450_v50 }
 0x1b4   : > { %2446 = vmatmul.mubr.bf16.gmra.mxu1 %v1451_v45 }
 0x1b5   : > { %2729 = shalt.err (!%p2726_p5)
}
 0x1b6   : > { %s2730_s12 = scalar_lea.hbm %s3254_s14, 1024  ;;  %s2734_s13 = scalar_lea.hbm %s3358_s7, 4096 }
 0x1b7   : > { %p2731_p12 = scmp.ne.s32.totalorder %s3254_s14, %s2730_s12  ;;  %p2735_p1 = scmp.lt.s32.totalorder %s3254_s14, %s3358_s7 }
 0x1b8   : > { %p2736_p6 = scmp.lt.s32.totalorder %s2734_s13, %s2730_s12 }
 0x1b9   : > { %p2732_p2 = pnand %p2731_p12, %p3401_p13 }
 0x1ba   : > { %p2737_p9 = por %p2736_p6, %p2735_p1 }
 0x1bb   : > { %p2733_p7 = pneg %p2732_p2 }
 0x1bd   : > { %p2738_p11 = pnand %p2737_p9, %p2733_p7 }
 0x1bf   : > { %2741 = shalt.err (!%p2738_p11)
}
 0x1c0   : > { %s2848_s16 = smov 64   ;;  %s2849_s11 = smov 4  }
 0x1c1   : > { %2463 = dma.vmem_to_hbm [thread:$0]  (%p3401_p13), %s3256_s8, 1024, %s3254_s14, %s1766_s17, %s2848_s16, %s2848_s16, %s2849_s11  }
 0x1c2   : > { %s3285_s23 = scalar_lea.vmem [#allocation12], %s3044_s21  ;;  %s3402_s17 = sld [smem:[#allocation30_spill]] }
 0x1c3   : > { %s1800_s21 = sshll.u32 %s3285_s23, 4  ;;  %s1771_s22 = scalar_lea.sflag [#allocation13], %s3041_s27  ;;  %s3294_s21 = int_to_ptr.vmem [resolvable:$true] %s1800_s21 }
 0x1c4   : > { %s2742_s25 = scalar_lea.vmem %s3294_s21, 1024  ;;  %s2850_s12 = smov [#allocation12]  }
 0x1c5   : > { %p2743_p4 = scmp.ne.s32.totalorder %s3294_s21, %s2742_s25  ;;  %s2746_s18 = sshll.u32 %s2850_s12, 4  ;;  %s2747_s18 = int_to_ptr.vmem [resolvable:$false] %s2746_s18 }
 0x1c6   : > { %s2748_s20 = scalar_lea.vmem %s2747_s18, 2048  ;;  %p2749_p10 = scmp.lt.s32.totalorder %s3294_s21, %s2747_s18 }
 0x1c7   : > { %p2744_p3 = pnand %p2743_p4, %p3401_p13  ;;  %p2750_p0 = scmp.lt.s32.totalorder %s2748_s20, %s2742_s25 }
 0x1c8   : > { %s3302_s24 = scalar_lea.hbm %s3402_s17, %s2129_s5 }
 0x1c9   : > { %p2745_p8 = pneg %p2744_p3  ;;  %p2751_p5 = por %p2750_p0, %p2749_p10 }
 0x1cb   : > { %p2752_p12 = pnand %p2751_p5, %p2745_p8 }
 0x25c   : > { %v2435_v62 = vpop.f32.mrf.mxu1 }
 0x25e   : > { %v1622_v54 = vpop.f32.mrf.mxu1 }
 0x260   : > { %v2436_v19 = vpop.f32.mrf.mxu1 }
 0x261   : > { %v2179_v46 = vpack.c.bf16 %v2436_v19, %v2435_v62 }
 0x262   : > { %v1625_v53 = vpop.f32.mrf.mxu1 }
 0x263   : > { %2218 = vst [vmem:[%s3285_s23 + $0x8] sm:$0xff] %v2179_v46   ;;  %v2174_v55 = vpack.c.bf16 %v1625_v53, %v1622_v54 }
 0x264   : > { %v2439_v56 = vpop.f32.mrf.mxu1 }
 0x265   : > { %2175 = vst [vmem:[%s3285_s23] sm:$0xff] %v2174_v55  }
 0x266   : > { %v1638_v1 = vpop.f32.mrf.mxu1 }
 0x268   : > { %v2440_v2 = vpop.f32.mrf.mxu1 }
 0x269   : > { %v2189_v13 = vpack.c.bf16 %v2440_v2, %v2439_v56 }
 0x26a   : > { %v1641_v15 = vpop.f32.mrf.mxu1 }
 0x26b   : > { %2220 = vst [vmem:[%s3285_s23 + $0x18] sm:$0xff] %v2189_v13   ;;  %v2184_v14 = vpack.c.bf16 %v1641_v15, %v1638_v1 }
 0x26c   : > { %v2443_v16 = vpop.f32.mrf.mxu1 }
 0x26d   : > { %2219 = vst [vmem:[%s3285_s23 + $0x10] sm:$0xff] %v2184_v14  }
 0x26e   : > { %v1654_v58 = vpop.f32.mrf.mxu1 }
 0x270   : > { %v2444_v44 = vpop.f32.mrf.mxu1 }
 0x271   : > { %v2199_v49 = vpack.c.bf16 %v2444_v44, %v2443_v16 }
 0x272   : > { %v1657_v59 = vpop.f32.mrf.mxu1 }
 0x273   : > { %2222 = vst [vmem:[%s3285_s23 + $0x28] sm:$0xff] %v2199_v49   ;;  %v2194_v33 = vpack.c.bf16 %v1657_v59, %v1654_v58 }
 0x274   : > { %v2447_v35 = vpop.f32.mrf.mxu1 }
 0x275   : > { %2221 = vst [vmem:[%s3285_s23 + $0x20] sm:$0xff] %v2194_v33  }
 0x276   : > { %v1670_v34 = vpop.f32.mrf.mxu1 }
 0x278   : > { %v2448_v36 = vpop.f32.mrf.mxu1 }
 0x279   : > { %v2209_v60 = vpack.c.bf16 %v2448_v36, %v2447_v35 }
 0x27a   : > { %v1673_v3 = vpop.f32.mrf.mxu1 }
 0x27b   : > { %2224 = vst [vmem:[%s3285_s23 + $0x38] sm:$0xff] %v2209_v60   ;;  %v2204_v4 = vpack.c.bf16 %v1673_v3, %v1670_v34 }
 0x27d   : > { %2223 = vst [vmem:[%s3285_s23 + $0x30] sm:$0xff] %v2204_v4  }
 0x27e   : > { %2755 = shalt.err (!%p2752_p12)
}
 0x27f   : > { %s2756_s30 = scalar_lea.hbm %s3302_s24, 1024  ;;  %s2760_s13 = scalar_lea.hbm %s3402_s17, 4096 }
 0x280   : > { %p2757_p2 = scmp.ne.s32.totalorder %s3302_s24, %s2756_s30  ;;  %p2761_p6 = scmp.lt.s32.totalorder %s3302_s24, %s3402_s17 }
 0x281   : > { %p2762_p9 = scmp.lt.s32.totalorder %s2760_s13, %s2756_s30 }
 0x282   : > { %p2758_p7 = pnand %p2757_p2, %p3401_p13 }
 0x283   : > { %p2763_p11 = por %p2762_p9, %p2761_p6 }
 0x284   : > { %p2759_p1 = pneg %p2758_p7 }
 0x286   : > { %p2764_p4 = pnand %p2763_p11, %p2759_p1 }
 0x288   : > { %2767 = shalt.err (!%p2764_p4)
}
 0x289   : > { %2464 = dma.vmem_to_hbm [thread:$0]  (%p3401_p13), %s3294_s21, 1024, %s3302_s24, %s1771_s22, %s2848_s16, %s2848_s16, %s2849_s11  }
 0x28a PF: > { %s3403_s23 = sld [smem:[#allocation20_spill]]  ;;  %p2495_p3 = scmp.ge.s32.totalorder %s2838_s10, 2 }
 0x28b   : > { %s3404_s8 = sld [smem:[#allocation21_spill]] }
 0x290   : > { %s1815_s14 = sand.u32 1, %s3403_s23  }
 0x291   : > { %p3405_p8 = scmp.ne.s32.totalorder %s3404_s8, 0  ;;  %s1816_s25 = scalar_lea.sflag [#allocation5], %s1815_s14 }
 0x293   : > { %p2482_p10 = pnand %p2495_p3, %p3405_p8 }
 0x295   : > { %p2483_p0 = pneg %p2482_p10 }
 0x297   : > { %2809 = dma.done.wait (%p2483_p0), %s1816_s25, 1024  }
 0x298   : > { %2811 = vsyncadd (%p2483_p0), %s1816_s25, 4294966272  ;;  %s1825_s12 = scalar_lea.sflag [#allocation13], %s1815_s14 }
 0x299   : > { %2813 = dma.done.wait (%p2483_p0), %s1825_s12, 1024  }
 0x29a   : > { %2815 = vsyncadd (%p2483_p0), %s1825_s12, 4294966272  ;;  %s30_s10 = sadd.s32 1, %s2838_s10   ;;  %s3406_s27 = smov %s2822_s28 }
 0x29b   : > { %p27_p5 = scmp.ge.s32.totalorder %s30_s10, 6   ;;  %s3407_s28 = smov %s2826_s29 }
 0x29c   : > { %s3408_s29 = smov %s3024_s26  ;;  %s3409_s30 = smov %s2834_s9 }
 0x29d   : > { %s3410_s9 = smov %s3412_s19  ;;  %29 = sbr.rel (!%p27_p5) target bundleno = 15 (0xf), region = 138 }
 0x2a2   :  { %1830 = vsyncpa [#allocation4], 1 }
 0x2a3   :  { %1832 = vsyncpa [#allocation4 + $0x1], 1 }
 0x2a4   :  { %1833 = vsyncpa [#allocation7], 1 }
 0x2a5   :  { %1835 = vsyncpa [#allocation7 + $0x1], 1 }
 0x2a6   :  { %1836 = vsyncpa [#allocation10], 1 }
 0x2a7   :  { %1837 = vsyncpa [#allocation5], 1 }
 0x2a8   :  { %1839 = vsyncpa [#allocation5 + $0x1], 1 }
 0x2a9   :  { %1840 = vsyncpa [#allocation13], 1 }
 0x2aa   :  { %1842 = vsyncpa [#allocation13 + $0x1], 1 }

</bundles_post_ra>
